<compile_context>
chip_gen: v5e
topology: v5e:2x2
jax: 0.10.0
libtpu: 0.0.40
codegen_flags: <defaults>
</compile_context>

<pallas_src>
import math
import functools

import jax
import jax.numpy as jnp
from jax.experimental import pallas as pl
from jax.experimental.pallas import tpu as pltpu


EPS = 1e-5


def _vmem_limit_bytes():
    # v7x: 64 MiB physical VMEM per TC -> leave headroom (48 MiB).
    # v4/v5e/v6e: 128 MiB physical -> allow larger double-buffered tiles.
    try:
        kind = jax.devices()[0].device_kind.lower()
    except Exception:
        kind = ""
    if ("v4" in kind) or ("v5" in kind) or ("v6" in kind):
        return 96 * 1024 * 1024
    return 48 * 1024 * 1024


VMEM_LIMIT_BYTES = _vmem_limit_bytes()


def _cparams(dims):
    return pltpu.CompilerParams(dimension_semantics=dims,
                                vmem_limit_bytes=VMEM_LIMIT_BYTES)


def _pick_tile(dim, target, align):
    """Largest tile <= target that divides dim and is `align`-aligned, else full dim."""
    if dim <= target:
        return dim                      # full dimension is always a legal block
    t = target - (target % align)
    while t >= align:
        if dim % t == 0:
            return t
        t -= align
    return dim                          # fallback: single full block


# --------------------------------------------------------------------------
# Kernel 1: fused RMSNorm + matmul        out = (rmsnorm(x) * gamma) @ W
#   xn computed ONCE per row tile (at j == 0) into VMEM scratch and reused
#   for every column tile j.  Used for fused QKV projection and LM head.
# --------------------------------------------------------------------------

def _rmsnorm_matmul_kernel(x_ref, g_ref, w_ref, o_ref, xn_ref, *, eps):
    @pl.when(pl.program_id(1) == 0)
    def _():
        x = x_ref[...].astype(jnp.float32)                   # (tm, D) f32
        ms = jnp.mean(x * x, axis=-1, keepdims=True)
        xn_ref[...] = (x * jax.lax.rsqrt(ms + eps) * g_ref[...]).astype(xn_ref.dtype)

    o_ref[...] = jnp.dot(xn_ref[...], w_ref[...],
                         preferred_element_type=jnp.float32).astype(o_ref.dtype)


def rmsnorm_matmul(x, gamma, w, *, out_dtype, eps=EPS, tm=256, tn=512):
    """x: (M, D) bf16, gamma: (D,) f32, w: (D, N) bf16 -> (M, N) out_dtype."""
    M, D = x.shape
    D2, N = w.shape
    assert D == D2
    tm = _pick_tile(M, tm, 16)          # 16-aligned: bf16 packs 16 rows / sublane group
    tn = _pick_tile(N, tn, 128)
    grid = (M // tm, N // tn)
    return pl.pallas_call(
        functools.partial(_rmsnorm_matmul_kernel, eps=eps),
        grid=grid,
        in_specs=[pl.BlockSpec((tm, D), lambda i, j: (i, 0)),
                  pl.BlockSpec((1, D), lambda i, j: (0, 0)),
                  pl.BlockSpec((D, tn), lambda i, j: (0, j))],
        out_specs=pl.BlockSpec((tm, tn), lambda i, j: (i, j)),
        out_shape=jax.ShapeDtypeStruct((M, N), out_dtype),
        scratch_shapes=[pltpu.VMEM((tm, D), jnp.bfloat16)],
        compiler_params=_cparams(("parallel", "arbitrary")),
    )(x, gamma.reshape(1, D), w)


# --------------------------------------------------------------------------
# Kernel 2: K-tiled matmul with fused residual   out = res + a @ W   (bf16 I/O)
#   used for the attention output projection.
# --------------------------------------------------------------------------

def _matmul_residual_kernel(a_ref, w_ref, r_ref, o_ref, acc_ref):
    k = pl.program_id(2)

    @pl.when(k == 0)
    def _():
        acc_ref[...] = jnp.zeros_like(acc_ref)

    acc_ref[...] += jnp.dot(a_ref[...], w_ref[...],
                            preferred_element_type=jnp.float32)

    @pl.when(k == pl.num_programs(2) - 1)
    def _():
        o_ref[...] = (r_ref[...].astype(jnp.float32) + acc_ref[...]).astype(o_ref.dtype)


def matmul_residual(a, w, res, *, tm=256, tn=512, tk=512):
    """a: (M, K) bf16, w: (K, N) bf16, res: (M, N) bf16 -> (M, N) bf16."""
    M, K = a.shape
    K2, N = w.shape
    assert K == K2 and res.shape == (M, N)
    tm = _pick_tile(M, tm, 16)
    tn = _pick_tile(N, tn, 128)
    tk = _pick_tile(K, tk, 128)
    grid = (M // tm, N // tn, K // tk)
    return pl.pallas_call(
        _matmul_residual_kernel,
        grid=grid,
        in_specs=[pl.BlockSpec((tm, tk), lambda i, j, kk: (i, kk)),
                  pl.BlockSpec((tk, tn), lambda i, j, kk: (kk, j)),
                  pl.BlockSpec((tm, tn), lambda i, j, kk: (i, j))],
        out_specs=pl.BlockSpec((tm, tn), lambda i, j, kk: (i, j)),
        out_shape=jax.ShapeDtypeStruct((M, N), jnp.bfloat16),
        scratch_shapes=[pltpu.VMEM((tm, tn), jnp.float32)],
        compiler_params=_cparams(("parallel", "parallel", "arbitrary")),
    )(a, w, res)


# --------------------------------------------------------------------------
# Kernel 3: fused RMSNorm + FFN + residual, tiled over d_ff (bf16 I/O)
#   out = x + GELU(rmsnorm(x) @ W1) @ W2
# --------------------------------------------------------------------------

def _rmsnorm_ffn_kernel(x_ref, g_ref, w1_ref, w2_ref, o_ref, xn_ref, acc_ref, *, eps):
    f = pl.program_id(1)

    @pl.when(f == 0)
    def _():
        x = x_ref[...].astype(jnp.float32)
        ms = jnp.mean(x * x, axis=-1, keepdims=True)
        xn_ref[...] = (x * jax.lax.rsqrt(ms + eps) * g_ref[...]).astype(xn_ref.dtype)
        acc_ref[...] = jnp.zeros_like(acc_ref)

    h = jnp.dot(xn_ref[...], w1_ref[...], preferred_element_type=jnp.float32)
    # GELU (tanh approximation) in f32 on the VPU/EUP, filler under the MXU.
    # TODO(synk): reference may use exact-erf GELU; tanh approx differs < 1e-3 rel.
    c = math.sqrt(2.0 / math.pi)
    gelu = 0.5 * h * (1.0 + jnp.tanh(c * (h + 0.044715 * h * h * h)))
    acc_ref[...] += jnp.dot(gelu.astype(w2_ref.dtype), w2_ref[...],
                            preferred_element_type=jnp.float32)

    @pl.when(f == pl.num_programs(1) - 1)
    def _():
        o_ref[...] = (x_ref[...].astype(jnp.float32) + acc_ref[...]).astype(o_ref.dtype)


def rmsnorm_ffn_residual(x, gamma, w1, w2, *, eps=EPS, tm=256, tf=512):
    """x: (M, D) bf16, w1: (D, F) bf16, w2: (F, D) bf16 -> (M, D) bf16."""
    M, D = x.shape
    D1, F = w1.shape
    F2, D2 = w2.shape
    assert D == D1 and F == F2 and D == D2
    # TODO(synk): on v7x with D >= 4096 drop tm to 128 to keep double-buffering
    # under the 48 MiB limit.
    tm = _pick_tile(M, tm, 16)
    tf = _pick_tile(F, tf, 128)
    grid = (M // tm, F // tf)
    return pl.pallas_call(
        functools.partial(_rmsnorm_ffn_kernel, eps=eps),
        grid=grid,
        in_specs=[pl.BlockSpec((tm, D), lambda i, f: (i, 0)),
                  pl.BlockSpec((1, D), lambda i, f: (0, 0)),
                  pl.BlockSpec((D, tf), lambda i, f: (0, f)),
                  pl.BlockSpec((tf, D), lambda i, f: (f, 0))],
        out_specs=pl.BlockSpec((tm, D), lambda i, f: (i, 0)),
        out_shape=jax.ShapeDtypeStruct((M, D), jnp.bfloat16),
        scratch_shapes=[pltpu.VMEM((tm, D), jnp.bfloat16),
                        pltpu.VMEM((tm, D), jnp.float32)],
        compiler_params=_cparams(("parallel", "arbitrary")),
    )(x, gamma.reshape(1, D), w1, w2)


# --------------------------------------------------------------------------
# Kernel 4: flash-style causal attention, transpose-free head handling
#   qkv: (B, T, 3, H, Dh) bf16 (a free reshape of the (M, 3D) QKV output)
#   out: (B, T, H, Dh)    bf16 (a free reshape away from (M, D))
# --------------------------------------------------------------------------

def _flash_attn_kernel(q_ref, k_ref, v_ref, o_ref, m_sc, l_sc, acc_sc, *,
                       scale, num_heads):
    qi = pl.program_id(1)
    ki = pl.program_id(2)
    tile = q_ref.shape[0]

    @pl.when(ki == 0)
    def _():
        m_sc[...] = jnp.full(m_sc.shape, -jnp.inf, jnp.float32)
        l_sc[...] = jnp.zeros_like(l_sc)
        acc_sc[...] = jnp.zeros_like(acc_sc)

    # Skip KV blocks entirely above the causal diagonal (~2x FLOP saving).
    # Their DMA is also skipped because the k/v index_maps clamp to the diagonal.
    @pl.when(ki <= qi)
    def _():
        q_all = q_ref[...]                               # (tile, H, Dh) bf16
        k_all = k_ref[...]
        v_all = v_ref[...]
        row = qi * tile + jax.lax.broadcasted_iota(jnp.int32, (tile, tile), 0)
        col = ki * tile + jax.lax.broadcasted_iota(jnp.int32, (tile, tile), 1)
        causal = col <= row
        # TODO(synk): for Dh < 128, pack several heads per matmul to fill MXU
        # lanes; per-head 2-D matmuls underfill K/N when Dh is small.
        for h in range(num_heads):
            q = (q_all[:, h, :] * scale).astype(q_all.dtype)   # scale q once (tile*Dh)
            k = k_all[:, h, :]
            v = v_all[:, h, :]
            s = jax.lax.dot_general(q, k, (((1,), (1,)), ((), ())),
                                    preferred_element_type=jnp.float32)
            s = jnp.where(causal, s, -1e30)
            m_prev = m_sc[h]
            m_new = jnp.maximum(m_prev, jnp.max(s, axis=-1, keepdims=True))
            alpha = jnp.exp(m_prev - m_new)
            p = jnp.exp(s - m_new)
            l_sc[h] = alpha * l_sc[h] + jnp.sum(p, axis=-1, keepdims=True)
            acc_sc[h] = alpha * acc_sc[h] + jnp.dot(
                p.astype(v.dtype), v, preferred_element_type=jnp.float32)
            m_sc[h] = m_new

    @pl.when(ki == pl.num_programs(2) - 1)
    def _():
        for h in range(num_heads):
            o_ref[:, h, :] = (acc_sc[h] * pl.reciprocal(l_sc[h], approx=True)
                              ).astype(o_ref.dtype)


def _attn_tile(T):
    # 256 fills the 256x256 MXU on v6e/v7x; smaller tiles only for short sequences.
    for t in (256, 128, 64, 32, 16, 8):
        if T >= t and T % t == 0:
            return t
    return T


def flash_attention(qkv, *, num_heads, scale):
    """qkv: (B, T, 3, H, Dh) bf16 -> (B, T, H, Dh) bf16, causal multi-head attn."""
    B, T, three, H, Dh = qkv.shape
    assert three == 3 and H == num_heads
    tile = _attn_tile(T)
    assert T % tile == 0
    grid = (B, T // tile, T // tile)

    q_map = lambda b, qi, ki: (b, qi, 0, 0, 0)
    # Clamp kv block index to the diagonal: masked steps re-reference the
    # already-resident block, so no new K/V DMA is issued for them.
    k_map = lambda b, qi, ki: (b, jnp.minimum(ki, qi), 1, 0, 0)
    v_map = lambda b, qi, ki: (b, jnp.minimum(ki, qi), 2, 0, 0)

    blk = (None, tile, None, H, Dh)     # last two dims == full dims -> legal block
    return pl.pallas_call(
        functools.partial(_flash_attn_kernel, scale=scale, num_heads=H),
        grid=grid,
        in_specs=[pl.BlockSpec(blk, q_map),
                  pl.BlockSpec(blk, k_map),
                  pl.BlockSpec(blk, v_map)],
        out_specs=pl.BlockSpec((None, tile, H, Dh), lambda b, qi, ki: (b, qi, 0, 0)),
        out_shape=jax.ShapeDtypeStruct((B, T, H, Dh), qkv.dtype),
        scratch_shapes=[pltpu.VMEM((H, tile, 1), jnp.float32),    # m (running max)
                        pltpu.VMEM((H, tile, 1), jnp.float32),    # l (running denom)
                        pltpu.VMEM((H, tile, Dh), jnp.float32)],  # acc
        compiler_params=_cparams(("parallel", "parallel", "arbitrary")),
    )(qkv, qkv, qkv)


# --------------------------------------------------------------------------
# Model (glue in plain JAX, compute in Pallas).  Residual stream is bf16.
# --------------------------------------------------------------------------

def transformer_block(x2, p, B, T, num_heads):
    M, D = x2.shape
    H = num_heads
    Dh = D // H

    # --- Multi-head causal self-attention sublayer (pre-RMSNorm) ---
    # Fused RMSNorm + (Wq|Wk|Wv) projection: one read of x -> (M, 3D) bf16.
    qkv = rmsnorm_matmul(x2, p["ln1_w"], p["wqkv"], out_dtype=jnp.bfloat16)
    # Free reshape; column layout of wqkv is [q|k|v] x [head] x [Dh].
    qkv = qkv.reshape(B, T, 3, H, Dh)
    a = flash_attention(qkv, num_heads=H, scale=1.0 / math.sqrt(Dh))   # (B,T,H,Dh)
    a = a.reshape(M, D)                                                # free reshape
    # Output projection with fused residual add (K-tiled accumulator).
    x2 = matmul_residual(a, p["wo"], x2)                               # (M, D) bf16

    # --- Feed-forward sublayer: RMSNorm + W1 + GELU + W2 + residual fused ---
    x2 = rmsnorm_ffn_residual(x2, p["ln2_w"], p["w1"], p["w2"])        # (M, D) bf16
    return x2


def transformer_lm_forward(tokens, params, num_heads):
    B, T = tokens.shape
    D = params["tok_emb"].shape[1]
    V = params["lm_head_w"].shape[1]

    # Token + learned positional embeddings (gather is JAX glue); bf16 residual stream.
    x = params["tok_emb"][tokens] + params["pos_emb"][:T][None, :, :]    # (B, T, D) f32
    x2 = x.astype(jnp.bfloat16).reshape(B * T, D)
    # emb_dropout / attn_pdrop / residual_pdrop: identity (eval semantics).

    for layer_p in params["layers"]:
        x2 = transformer_block(x2, layer_p, B, T, num_heads)

    # Final RMSNorm fused into the vocab-tiled LM head (xn cached across vocab tiles).
    logits = rmsnorm_matmul(x2, params["ln_final_w"], params["lm_head_w"],
                            out_dtype=jnp.float32)
    return logits.reshape(B, T, V)


# --------------------------------------------------------------------------
# Deterministic parameter initialization (matmul weights stored in bf16)
# --------------------------------------------------------------------------

def init_params(key, vocab_size, context_length, d_model, num_layers, d_ff):
    def normal(k, shape, scale=0.02, dtype=jnp.float32):
        return (scale * jax.random.normal(k, shape, dtype=jnp.float32)).astype(dtype)

    keys = jax.random.split(key, 3 + num_layers)
    params = {
        "tok_emb": normal(keys[0], (vocab_size, d_model)),
        "pos_emb": normal(keys[1], (context_length, d_model)),
        "ln_final_w": jnp.ones((d_model,), jnp.float32),
        "lm_head_w": normal(keys[2], (d_model, vocab_size), dtype=jnp.bfloat16),
        "layers": [],
    }
    for l in range(num_layers):
        lk = jax.random.split(keys[3 + l], 6)
        wq = normal(lk[0], (d_model, d_model))
        wk = normal(lk[1], (d_model, d_model))
        wv = normal(lk[2], (d_model, d_model))
        params["layers"].append({
            "ln1_w": jnp.ones((d_model,), jnp.float32),
            "ln2_w": jnp.ones((d_model,), jnp.float32),
            "wqkv": jnp.concatenate([wq, wk, wv], axis=1).astype(jnp.bfloat16),
            "wo": normal(lk[3], (d_model, d_model), dtype=jnp.bfloat16),
            "w1": normal(lk[4], (d_model, d_ff), dtype=jnp.bfloat16),
            "w2": normal(lk[5], (d_ff, d_model), dtype=jnp.bfloat16),
        })
    return params


# --------------------------------------------------------------------------
# Main
# --------------------------------------------------------------------------

if __name__ == "__main__":
    vocab_size = 64
    context_length = 16
    d_model = 32
    num_layers = 2
    num_heads = 2
    d_ff = 64
    batch, seq = 2, 8

    key = jax.random.PRNGKey(0)
    pkey, tkey = jax.random.split(key)
    params = init_params(pkey, vocab_size, context_length, d_model, num_layers, d_ff)
    tokens = jax.random.randint(tkey, (batch, seq), 0, vocab_size, dtype=jnp.int32)

    fwd = jax.jit(lambda tok, prm: transformer_lm_forward(tok, prm, num_heads))
    logits = jax.block_until_ready(fwd(tokens, params))

    assert logits.shape == (batch, seq, vocab_size)
    assert bool(jnp.all(jnp.isfinite(logits)))
    print("KERNEL_OK")
</pallas_src>

<mosaic_0001>
module attributes {stable_mosaic.version = 11 : i64} {
  func.func @_flash_attn_kernel(%arg0: i32, %arg1: i32, %arg2: i32, %arg3: memref<1x8x1x2x16xbf16, #tpu.memory_space<vmem>>, %arg4: memref<1x8x1x2x16xbf16, #tpu.memory_space<vmem>>, %arg5: memref<1x8x1x2x16xbf16, #tpu.memory_space<vmem>>, %arg6: memref<1x8x2x16xbf16, #tpu.memory_space<vmem>>, %arg7: memref<2x8x1xf32, #tpu.memory_space<vmem>>, %arg8: memref<2x8x1xf32, #tpu.memory_space<vmem>>, %arg9: memref<2x8x16xf32, #tpu.memory_space<vmem>>) attributes {dimension_semantics = [#tpu.dimension_semantics<parallel>, #tpu.dimension_semantics<parallel>, #tpu.dimension_semantics<arbitrary>], iteration_bounds = array<i64: 2, 1, 1>, scalar_prefetch = 0 : i64, scratch_operands = 3 : i64, tpu.core_type = #tpu.core_type<tc>, window_params = [{transform_indices = @transform_0, window_bounds = array<i64: 1, 8, 1, 2, 16>}, {transform_indices = @transform_1, window_bounds = array<i64: 1, 8, 1, 2, 16>}, {transform_indices = @transform_2, window_bounds = array<i64: 1, 8, 1, 2, 16>}, {transform_indices = @transform_3, window_bounds = array<i64: 1, 8, 2, 16>}]} {
    %c0_i32 = arith.constant 0 : i32
    %0 = arith.cmpi eq, %arg2, %c0_i32 : i32
    %1 = arith.extui %0 : i1 to i32
    %c0_i32_0 = arith.constant 0 : i32
    %2 = arith.cmpi ne, %1, %c0_i32_0 : i32
    scf.if %2 {
      %cst = arith.constant 0xFF800000 : f32
      %9 = vector.broadcast %cst : f32 to vector<2x8x1xf32>
      %c0 = arith.constant 0 : index
      %c0_4 = arith.constant 0 : index
      %c0_5 = arith.constant 0 : index
      %10 = vector.load %arg7[%c0, %c0_4, %c0_5] : memref<2x8x1xf32, #tpu.memory_space<vmem>>, vector<2x8x1xf32>
      tpu.vector_store %arg7[%c0, %c0_4, %c0_5], %9 {strides = array<i32>} : memref<2x8x1xf32, #tpu.memory_space<vmem>>, vector<2x8x1xf32>,
      %cst_6 = arith.constant 0.000000e+00 : f32
      %11 = vector.broadcast %cst_6 : f32 to vector<2x8x1xf32>
      %c0_7 = arith.constant 0 : index
      %c0_8 = arith.constant 0 : index
      %c0_9 = arith.constant 0 : index
      %12 = vector.load %arg8[%c0_7, %c0_8, %c0_9] : memref<2x8x1xf32, #tpu.memory_space<vmem>>, vector<2x8x1xf32>
      tpu.vector_store %arg8[%c0_7, %c0_8, %c0_9], %11 {strides = array<i32>} : memref<2x8x1xf32, #tpu.memory_space<vmem>>, vector<2x8x1xf32>,
      %cst_10 = arith.constant 0.000000e+00 : f32
      %13 = vector.broadcast %cst_10 : f32 to vector<2x8x16xf32>
      %c0_11 = arith.constant 0 : index
      %c0_12 = arith.constant 0 : index
      %c0_13 = arith.constant 0 : index
      %14 = vector.load %arg9[%c0_11, %c0_12, %c0_13] : memref<2x8x16xf32, #tpu.memory_space<vmem>>, vector<2x8x16xf32>
      tpu.vector_store %arg9[%c0_11, %c0_12, %c0_13], %13 {strides = array<i32>} : memref<2x8x16xf32, #tpu.memory_space<vmem>>, vector<2x8x16xf32>,
    } else {
    }
    %3 = arith.cmpi sle, %arg2, %arg1 : i32
    %4 = arith.extui %3 : i1 to i32
    %c0_i32_1 = arith.constant 0 : i32
    %5 = arith.cmpi ne, %4, %c0_i32_1 : i32
    scf.if %5 {
      %c0 = arith.constant 0 : index
      %c0_4 = arith.constant 0 : index
      %c0_5 = arith.constant 0 : index
      %c0_6 = arith.constant 0 : index
      %c0_7 = arith.constant 0 : index
      %9 = vector.load %arg3[%c0, %c0_4, %c0_5, %c0_6, %c0_7] : memref<1x8x1x2x16xbf16, #tpu.memory_space<vmem>>, vector<1x8x1x2x16xbf16>
      %10 = vector.shape_cast %9 : vector<1x8x1x2x16xbf16> to vector<8x2x16xbf16>
      %c0_8 = arith.constant 0 : index
      %c0_9 = arith.constant 0 : index
      %c0_10 = arith.constant 0 : index
      %c0_11 = arith.constant 0 : index
      %c0_12 = arith.constant 0 : index
      %11 = vector.load %arg4[%c0_8, %c0_9, %c0_10, %c0_11, %c0_12] : memref<1x8x1x2x16xbf16, #tpu.memory_space<vmem>>, vector<1x8x1x2x16xbf16>
      %12 = vector.shape_cast %11 : vector<1x8x1x2x16xbf16> to vector<8x2x16xbf16>
      %c0_13 = arith.constant 0 : index
      %c0_14 = arith.constant 0 : index
      %c0_15 = arith.constant 0 : index
      %c0_16 = arith.constant 0 : index
      %c0_17 = arith.constant 0 : index
      %13 = vector.load %arg5[%c0_13, %c0_14, %c0_15, %c0_16, %c0_17] : memref<1x8x1x2x16xbf16, #tpu.memory_space<vmem>>, vector<1x8x1x2x16xbf16>
      %14 = vector.shape_cast %13 : vector<1x8x1x2x16xbf16> to vector<8x2x16xbf16>
      %c8_i32 = arith.constant 8 : i32
      %15 = arith.muli %arg1, %c8_i32 : i32
      %16 = tpu.iota {dimensions = array<i32: 0>} : vector<8x8xi32>
      %17 = vector.broadcast %15 : i32 to vector<8x8xi32>
      %18 = arith.addi %17, %16 : vector<8x8xi32>
      %c8_i32_18 = arith.constant 8 : i32
      %19 = arith.muli %arg2, %c8_i32_18 : i32
      %20 = tpu.iota {dimensions = array<i32: 1>} : vector<8x8xi32>
      %21 = vector.broadcast %19 : i32 to vector<8x8xi32>
      %22 = arith.addi %21, %20 : vector<8x8xi32>
      %23 = arith.cmpi sle, %22, %18 : vector<8x8xi32>
      %24 = vector.extract_strided_slice %10 {offsets = [0, 0, 0], sizes = [8, 1, 16], strides = [1, 1, 1]} : vector<8x2x16xbf16> to vector<8x1x16xbf16>
      %25 = vector.shape_cast %24 : vector<8x1x16xbf16> to vector<8x16xbf16>
      %cst = arith.constant 2.500000e-01 : bf16
      %26 = vector.broadcast %cst : bf16 to vector<8x16xbf16>
      %27 = arith.mulf %25, %26 : vector<8x16xbf16>
      %28 = vector.extract_strided_slice %12 {offsets = [0, 0, 0], sizes = [8, 1, 16], strides = [1, 1, 1]} : vector<8x2x16xbf16> to vector<8x1x16xbf16>
      %29 = vector.shape_cast %28 : vector<8x1x16xbf16> to vector<8x16xbf16>
      %30 = vector.extract_strided_slice %14 {offsets = [0, 0, 0], sizes = [8, 1, 16], strides = [1, 1, 1]} : vector<8x2x16xbf16> to vector<8x1x16xbf16>
      %31 = vector.shape_cast %30 : vector<8x1x16xbf16> to vector<8x16xbf16>
      %cst_19 = arith.constant dense<0.000000e+00> : vector<8x8xf32>
      %32 = tpu.matmul %27, %29, %cst_19 {dimension_numbers = #tpu.dot_dimension_numbers<[1], [1], [0], [0], [0, 0, 1, 0], [], []>} : vector<8x16xbf16>, vector<8x16xbf16>, vector<8x8xf32> -> vector<8x8xf32>
      %cst_20 = arith.constant -1.000000e+30 : f32
      %33 = vector.broadcast %cst_20 : f32 to vector<8x8xf32>
      %34 = arith.select %23, %32, %33 : vector<8x8xi1>, vector<8x8xf32>
      %c0_21 = arith.constant 0 : index
      %c0_22 = arith.constant 0 : index
      %c0_23 = arith.constant 0 : index
      %35 = vector.load %arg7[%c0_21, %c0_22, %c0_23] : memref<2x8x1xf32, #tpu.memory_space<vmem>>, vector<1x8x1xf32>
      %36 = vector.shape_cast %35 : vector<1x8x1xf32> to vector<8x1xf32>
      %cst_24 = arith.constant dense<0xFF800000> : vector<8xf32>
      %37 = vector.multi_reduction <maximumf>, %34, %cst_24 [1] : vector<8x8xf32> to vector<8xf32>
      %38 = vector.shape_cast %37 : vector<8xf32> to vector<8x1xf32>
      %39 = arith.maximumf %36, %38 : vector<8x1xf32>
      %40 = arith.subf %36, %39 : vector<8x1xf32>
      %41 = math.exp %40 : vector<8x1xf32>
      %42 = vector.broadcast %39 : vector<8x1xf32> to vector<8x8xf32>
      %43 = arith.subf %34, %42 : vector<8x8xf32>
      %44 = math.exp %43 : vector<8x8xf32>
      %c0_25 = arith.constant 0 : index
      %c0_26 = arith.constant 0 : index
      %c0_27 = arith.constant 0 : index
      %45 = vector.load %arg8[%c0_25, %c0_26, %c0_27] : memref<2x8x1xf32, #tpu.memory_space<vmem>>, vector<1x8x1xf32>
      %46 = vector.shape_cast %45 : vector<1x8x1xf32> to vector<8x1xf32>
      %47 = arith.mulf %41, %46 : vector<8x1xf32>
      %cst_28 = arith.constant dense<0.000000e+00> : vector<8xf32>
      %48 = vector.multi_reduction <add>, %44, %cst_28 [1] : vector<8x8xf32> to vector<8xf32>
      %49 = vector.shape_cast %48 : vector<8xf32> to vector<8x1xf32>
      %50 = arith.addf %47, %49 : vector<8x1xf32>
      %c0_29 = arith.constant 0 : index
      %c0_30 = arith.constant 0 : index
      %c0_31 = arith.constant 0 : index
      %51 = vector.load %arg8[%c0_29, %c0_30, %c0_31] : memref<2x8x1xf32, #tpu.memory_space<vmem>>, vector<1x8x1xf32>
      %52 = vector.shape_cast %51 : vector<1x8x1xf32> to vector<8x1xf32>
      %53 = vector.shape_cast %50 : vector<8x1xf32> to vector<1x8x1xf32>
      tpu.vector_store %arg8[%c0_29, %c0_30, %c0_31], %53 {strides = array<i32>} : memref<2x8x1xf32, #tpu.memory_space<vmem>>, vector<1x8x1xf32>,
      %c0_32 = arith.constant 0 : index
      %c0_33 = arith.constant 0 : index
      %c0_34 = arith.constant 0 : index
      %54 = vector.load %arg9[%c0_32, %c0_33, %c0_34] : memref<2x8x16xf32, #tpu.memory_space<vmem>>, vector<1x8x16xf32>
      %55 = vector.shape_cast %54 : vector<1x8x16xf32> to vector<8x16xf32>
      %56 = vector.broadcast %41 : vector<8x1xf32> to vector<8x16xf32>
      %57 = arith.mulf %56, %55 : vector<8x16xf32>
      %58 = arith.truncf %44 : vector<8x8xf32> to vector<8x8xbf16>
      %cst_35 = arith.constant dense<0.000000e+00> : vector<8x16xf32>
      %59 = tpu.matmul %58, %31, %cst_35 {dimension_numbers = #tpu.dot_dimension_numbers<[1], [0], [0], [1], [0, 0, 1, 1], [], []>} : vector<8x8xbf16>, vector<8x16xbf16>, vector<8x16xf32> -> vector<8x16xf32>
      %60 = arith.addf %57, %59 : vector<8x16xf32>
      %c0_36 = arith.constant 0 : index
      %c0_37 = arith.constant 0 : index
      %c0_38 = arith.constant 0 : index
      %61 = vector.load %arg9[%c0_36, %c0_37, %c0_38] : memref<2x8x16xf32, #tpu.memory_space<vmem>>, vector<1x8x16xf32>
      %62 = vector.shape_cast %61 : vector<1x8x16xf32> to vector<8x16xf32>
      %63 = vector.shape_cast %60 : vector<8x16xf32> to vector<1x8x16xf32>
      tpu.vector_store %arg9[%c0_36, %c0_37, %c0_38], %63 {strides = array<i32>} : memref<2x8x16xf32, #tpu.memory_space<vmem>>, vector<1x8x16xf32>,
      %c0_39 = arith.constant 0 : index
      %c0_40 = arith.constant 0 : index
      %c0_41 = arith.constant 0 : index
      %64 = vector.load %arg7[%c0_39, %c0_40, %c0_41] : memref<2x8x1xf32, #tpu.memory_space<vmem>>, vector<1x8x1xf32>
      %65 = vector.shape_cast %64 : vector<1x8x1xf32> to vector<8x1xf32>
      %66 = vector.shape_cast %39 : vector<8x1xf32> to vector<1x8x1xf32>
      tpu.vector_store %arg7[%c0_39, %c0_40, %c0_41], %66 {strides = array<i32>} : memref<2x8x1xf32, #tpu.memory_space<vmem>>, vector<1x8x1xf32>,
      %67 = vector.extract_strided_slice %10 {offsets = [0, 1, 0], sizes = [8, 1, 16], strides = [1, 1, 1]} : vector<8x2x16xbf16> to vector<8x1x16xbf16>
      %68 = vector.shape_cast %67 : vector<8x1x16xbf16> to vector<8x16xbf16>
      %cst_42 = arith.constant 2.500000e-01 : bf16
      %69 = vector.broadcast %cst_42 : bf16 to vector<8x16xbf16>
      %70 = arith.mulf %68, %69 : vector<8x16xbf16>
      %71 = vector.extract_strided_slice %12 {offsets = [0, 1, 0], sizes = [8, 1, 16], strides = [1, 1, 1]} : vector<8x2x16xbf16> to vector<8x1x16xbf16>
      %72 = vector.shape_cast %71 : vector<8x1x16xbf16> to vector<8x16xbf16>
      %73 = vector.extract_strided_slice %14 {offsets = [0, 1, 0], sizes = [8, 1, 16], strides = [1, 1, 1]} : vector<8x2x16xbf16> to vector<8x1x16xbf16>
      %74 = vector.shape_cast %73 : vector<8x1x16xbf16> to vector<8x16xbf16>
      %cst_43 = arith.constant dense<0.000000e+00> : vector<8x8xf32>
      %75 = tpu.matmul %70, %72, %cst_43 {dimension_numbers = #tpu.dot_dimension_numbers<[1], [1], [0], [0], [0, 0, 1, 0], [], []>} : vector<8x16xbf16>, vector<8x16xbf16>, vector<8x8xf32> -> vector<8x8xf32>
      %cst_44 = arith.constant -1.000000e+30 : f32
      %76 = vector.broadcast %cst_44 : f32 to vector<8x8xf32>
      %77 = arith.select %23, %75, %76 : vector<8x8xi1>, vector<8x8xf32>
      %c1 = arith.constant 1 : index
      %c0_45 = arith.constant 0 : index
      %c0_46 = arith.constant 0 : index
      %78 = vector.load %arg7[%c1, %c0_45, %c0_46] : memref<2x8x1xf32, #tpu.memory_space<vmem>>, vector<1x8x1xf32>
      %79 = vector.shape_cast %78 : vector<1x8x1xf32> to vector<8x1xf32>
      %cst_47 = arith.constant dense<0xFF800000> : vector<8xf32>
      %80 = vector.multi_reduction <maximumf>, %77, %cst_47 [1] : vector<8x8xf32> to vector<8xf32>
      %81 = vector.shape_cast %80 : vector<8xf32> to vector<8x1xf32>
      %82 = arith.maximumf %79, %81 : vector<8x1xf32>
      %83 = arith.subf %79, %82 : vector<8x1xf32>
      %84 = math.exp %83 : vector<8x1xf32>
      %85 = vector.broadcast %82 : vector<8x1xf32> to vector<8x8xf32>
      %86 = arith.subf %77, %85 : vector<8x8xf32>
      %87 = math.exp %86 : vector<8x8xf32>
      %c1_48 = arith.constant 1 : index
      %c0_49 = arith.constant 0 : index
      %c0_50 = arith.constant 0 : index
      %88 = vector.load %arg8[%c1_48, %c0_49, %c0_50] : memref<2x8x1xf32, #tpu.memory_space<vmem>>, vector<1x8x1xf32>
      %89 = vector.shape_cast %88 : vector<1x8x1xf32> to vector<8x1xf32>
      %90 = arith.mulf %84, %89 : vector<8x1xf32>
      %cst_51 = arith.constant dense<0.000000e+00> : vector<8xf32>
      %91 = vector.multi_reduction <add>, %87, %cst_51 [1] : vector<8x8xf32> to vector<8xf32>
      %92 = vector.shape_cast %91 : vector<8xf32> to vector<8x1xf32>
      %93 = arith.addf %90, %92 : vector<8x1xf32>
      %c1_52 = arith.constant 1 : index
      %c0_53 = arith.constant 0 : index
      %c0_54 = arith.constant 0 : index
      %94 = vector.load %arg8[%c1_52, %c0_53, %c0_54] : memref<2x8x1xf32, #tpu.memory_space<vmem>>, vector<1x8x1xf32>
      %95 = vector.shape_cast %94 : vector<1x8x1xf32> to vector<8x1xf32>
      %96 = vector.shape_cast %93 : vector<8x1xf32> to vector<1x8x1xf32>
      tpu.vector_store %arg8[%c1_52, %c0_53, %c0_54], %96 {strides = array<i32>} : memref<2x8x1xf32, #tpu.memory_space<vmem>>, vector<1x8x1xf32>,
      %c1_55 = arith.constant 1 : index
      %c0_56 = arith.constant 0 : index
      %c0_57 = arith.constant 0 : index
      %97 = vector.load %arg9[%c1_55, %c0_56, %c0_57] : memref<2x8x16xf32, #tpu.memory_space<vmem>>, vector<1x8x16xf32>
      %98 = vector.shape_cast %97 : vector<1x8x16xf32> to vector<8x16xf32>
      %99 = vector.broadcast %84 : vector<8x1xf32> to vector<8x16xf32>
      %100 = arith.mulf %99, %98 : vector<8x16xf32>
      %101 = arith.truncf %87 : vector<8x8xf32> to vector<8x8xbf16>
      %cst_58 = arith.constant dense<0.000000e+00> : vector<8x16xf32>
      %102 = tpu.matmul %101, %74, %cst_58 {dimension_numbers = #tpu.dot_dimension_numbers<[1], [0], [0], [1], [0, 0, 1, 1], [], []>} : vector<8x8xbf16>, vector<8x16xbf16>, vector<8x16xf32> -> vector<8x16xf32>
      %103 = arith.addf %100, %102 : vector<8x16xf32>
      %c1_59 = arith.constant 1 : index
      %c0_60 = arith.constant 0 : index
      %c0_61 = arith.constant 0 : index
      %104 = vector.load %arg9[%c1_59, %c0_60, %c0_61] : memref<2x8x16xf32, #tpu.memory_space<vmem>>, vector<1x8x16xf32>
      %105 = vector.shape_cast %104 : vector<1x8x16xf32> to vector<8x16xf32>
      %106 = vector.shape_cast %103 : vector<8x16xf32> to vector<1x8x16xf32>
      tpu.vector_store %arg9[%c1_59, %c0_60, %c0_61], %106 {strides = array<i32>} : memref<2x8x16xf32, #tpu.memory_space<vmem>>, vector<1x8x16xf32>,
      %c1_62 = arith.constant 1 : index
      %c0_63 = arith.constant 0 : index
      %c0_64 = arith.constant 0 : index
      %107 = vector.load %arg7[%c1_62, %c0_63, %c0_64] : memref<2x8x1xf32, #tpu.memory_space<vmem>>, vector<1x8x1xf32>
      %108 = vector.shape_cast %107 : vector<1x8x1xf32> to vector<8x1xf32>
      %109 = vector.shape_cast %82 : vector<8x1xf32> to vector<1x8x1xf32>
      tpu.vector_store %arg7[%c1_62, %c0_63, %c0_64], %109 {strides = array<i32>} : memref<2x8x1xf32, #tpu.memory_space<vmem>>, vector<1x8x1xf32>,
    } else {
    }
    %c0_i32_2 = arith.constant 0 : i32
    %6 = arith.cmpi eq, %arg2, %c0_i32_2 : i32
    %7 = arith.extui %6 : i1 to i32
    %c0_i32_3 = arith.constant 0 : i32
    %8 = arith.cmpi ne, %7, %c0_i32_3 : i32
    scf.if %8 {
      %c0 = arith.constant 0 : index
      %c0_4 = arith.constant 0 : index
      %c0_5 = arith.constant 0 : index
      %9 = vector.load %arg9[%c0, %c0_4, %c0_5] : memref<2x8x16xf32, #tpu.memory_space<vmem>>, vector<1x8x16xf32>
      %10 = vector.shape_cast %9 : vector<1x8x16xf32> to vector<8x16xf32>
      %c0_6 = arith.constant 0 : index
      %c0_7 = arith.constant 0 : index
      %c0_8 = arith.constant 0 : index
      %11 = vector.load %arg8[%c0_6, %c0_7, %c0_8] : memref<2x8x1xf32, #tpu.memory_space<vmem>>, vector<1x8x1xf32>
      %12 = vector.shape_cast %11 : vector<1x8x1xf32> to vector<8x1xf32>
      %13 = tpu.reciprocal %12 {approx = true} : vector<8x1xf32> -> vector<8x1xf32>
      %14 = vector.broadcast %13 : vector<8x1xf32> to vector<8x16xf32>
      %15 = arith.mulf %10, %14 : vector<8x16xf32>
      %16 = arith.truncf %15 : vector<8x16xf32> to vector<8x16xbf16>
      %c0_9 = arith.constant 0 : index
      %c0_10 = arith.constant 0 : index
      %c0_11 = arith.constant 0 : index
      %c0_12 = arith.constant 0 : index
      %17 = vector.load %arg6[%c0_9, %c0_10, %c0_11, %c0_12] : memref<1x8x2x16xbf16, #tpu.memory_space<vmem>>, vector<1x8x1x16xbf16>
      %18 = vector.shape_cast %17 : vector<1x8x1x16xbf16> to vector<8x16xbf16>
      %19 = vector.shape_cast %16 : vector<8x16xbf16> to vector<1x8x1x16xbf16>
      tpu.vector_store %arg6[%c0_9, %c0_10, %c0_11, %c0_12], %19 {strides = array<i32>} : memref<1x8x2x16xbf16, #tpu.memory_space<vmem>>, vector<1x8x1x16xbf16>,
      %c1 = arith.constant 1 : index
      %c0_13 = arith.constant 0 : index
      %c0_14 = arith.constant 0 : index
      %20 = vector.load %arg9[%c1, %c0_13, %c0_14] : memref<2x8x16xf32, #tpu.memory_space<vmem>>, vector<1x8x16xf32>
      %21 = vector.shape_cast %20 : vector<1x8x16xf32> to vector<8x16xf32>
      %c1_15 = arith.constant 1 : index
      %c0_16 = arith.constant 0 : index
      %c0_17 = arith.constant 0 : index
      %22 = vector.load %arg8[%c1_15, %c0_16, %c0_17] : memref<2x8x1xf32, #tpu.memory_space<vmem>>, vector<1x8x1xf32>
      %23 = vector.shape_cast %22 : vector<1x8x1xf32> to vector<8x1xf32>
      %24 = tpu.reciprocal %23 {approx = true} : vector<8x1xf32> -> vector<8x1xf32>
      %25 = vector.broadcast %24 : vector<8x1xf32> to vector<8x16xf32>
      %26 = arith.mulf %21, %25 : vector<8x16xf32>
      %27 = arith.truncf %26 : vector<8x16xf32> to vector<8x16xbf16>
      %c0_18 = arith.constant 0 : index
      %c0_19 = arith.constant 0 : index
      %c1_20 = arith.constant 1 : index
      %c0_21 = arith.constant 0 : index
      %28 = vector.load %arg6[%c0_18, %c0_19, %c1_20, %c0_21] : memref<1x8x2x16xbf16, #tpu.memory_space<vmem>>, vector<1x8x1x16xbf16>
      %29 = vector.shape_cast %28 : vector<1x8x1x16xbf16> to vector<8x16xbf16>
      %30 = vector.shape_cast %27 : vector<8x16xbf16> to vector<1x8x1x16xbf16>
      tpu.vector_store %arg6[%c0_18, %c0_19, %c1_20, %c0_21], %30 {strides = array<i32>} : memref<1x8x2x16xbf16, #tpu.memory_space<vmem>>, vector<1x8x1x16xbf16>,
    } else {
    }
    return
  }
  func.func @transform_0(%arg0: i32, %arg1: i32, %arg2: i32) -> (i32, i32, i32, i32, i32) {
    %c0_i32 = arith.constant 0 : i32
    %c0_i32_0 = arith.constant 0 : i32
    %c0_i32_1 = arith.constant 0 : i32
    %c0_i32_2 = arith.constant 0 : i32
    return %arg0, %arg1, %c0_i32, %c0_i32_0, %c0_i32_1 : i32, i32, i32, i32, i32
  }
  func.func @transform_1(%arg0: i32, %arg1: i32, %arg2: i32) -> (i32, i32, i32, i32, i32) {
    %0 = arith.minsi %arg2, %arg1 : i32
    %c1_i32 = arith.constant 1 : i32
    %c0_i32 = arith.constant 0 : i32
    %c0_i32_0 = arith.constant 0 : i32
    %c0_i32_1 = arith.constant 0 : i32
    return %arg0, %0, %c1_i32, %c0_i32, %c0_i32_0 : i32, i32, i32, i32, i32
  }
  func.func @transform_2(%arg0: i32, %arg1: i32, %arg2: i32) -> (i32, i32, i32, i32, i32) {
    %0 = arith.minsi %arg2, %arg1 : i32
    %c2_i32 = arith.constant 2 : i32
    %c0_i32 = arith.constant 0 : i32
    %c0_i32_0 = arith.constant 0 : i32
    %c0_i32_1 = arith.constant 0 : i32
    return %arg0, %0, %c2_i32, %c0_i32, %c0_i32_0 : i32, i32, i32, i32, i32
  }
  func.func @transform_3(%arg0: i32, %arg1: i32, %arg2: i32) -> (i32, i32, i32, i32) {
    %c0_i32 = arith.constant 0 : i32
    %c0_i32_0 = arith.constant 0 : i32
    %c0_i32_1 = arith.constant 0 : i32
    return %arg0, %arg1, %c0_i32, %c0_i32_0 : i32, i32, i32, i32
  }
}

module attributes {stable_mosaic.version = 11 : i64} {
  func.func @_rmsnorm_matmul_kernel(%arg0: i32, %arg1: i32, %arg2: memref<16x32xbf16, #tpu.memory_space<vmem>>, %arg3: memref<1x32xf32, #tpu.memory_space<vmem>>, %arg4: memref<32x96xbf16, #tpu.memory_space<vmem>>, %arg5: memref<16x96xbf16, #tpu.memory_space<vmem>>, %arg6: memref<16x32xbf16, #tpu.memory_space<vmem>>) attributes {dimension_semantics = [#tpu.dimension_semantics<parallel>, #tpu.dimension_semantics<arbitrary>], iteration_bounds = array<i64: 1, 1>, scalar_prefetch = 0 : i64, scratch_operands = 1 : i64, tpu.core_type = #tpu.core_type<tc>, window_params = [{transform_indices = @transform_0, window_bounds = array<i64: 16, 32>}, {pipeline_mode = #tpu.pipeline_mode<synchronous>, transform_indices = @transform_1, window_bounds = array<i64: 1, 32>}, {transform_indices = @transform_2, window_bounds = array<i64: 32, 96>}, {transform_indices = @transform_3, window_bounds = array<i64: 16, 96>}]} {
    %c0_i32 = arith.constant 0 : i32
    %0 = arith.cmpi eq, %arg1, %c0_i32 : i32
    %1 = arith.extui %0 : i1 to i32
    %c0_i32_0 = arith.constant 0 : i32
    %2 = arith.cmpi ne, %1, %c0_i32_0 : i32
    scf.if %2 {
      %c0_6 = arith.constant 0 : index
      %c0_7 = arith.constant 0 : index
      %8 = vector.load %arg2[%c0_6, %c0_7] : memref<16x32xbf16, #tpu.memory_space<vmem>>, vector<16x32xbf16>
      %9 = arith.extf %8 : vector<16x32xbf16> to vector<16x32xf32>
      %10 = arith.mulf %9, %9 : vector<16x32xf32>
      %cst_8 = arith.constant dense<0.000000e+00> : vector<16xf32>
      %11 = vector.multi_reduction <add>, %10, %cst_8 [1] : vector<16x32xf32> to vector<16xf32>
      %12 = vector.shape_cast %11 : vector<16xf32> to vector<16x1xf32>
      %cst_9 = arith.constant 3.200000e+01 : f32
      %13 = vector.broadcast %cst_9 : f32 to vector<16x1xf32>
      %14 = arith.divf %12, %13 : vector<16x1xf32>
      %cst_10 = arith.constant 9.99999974E-6 : f32
      %15 = vector.broadcast %cst_10 : f32 to vector<16x1xf32>
      %16 = arith.addf %14, %15 : vector<16x1xf32>
      %17 = math.rsqrt %16 : vector<16x1xf32>
      %18 = vector.broadcast %17 : vector<16x1xf32> to vector<16x32xf32>
      %19 = arith.mulf %9, %18 : vector<16x32xf32>
      %c0_11 = arith.constant 0 : index
      %c0_12 = arith.constant 0 : index
      %20 = vector.load %arg3[%c0_11, %c0_12] : memref<1x32xf32, #tpu.memory_space<vmem>>, vector<1x32xf32>
      %21 = vector.broadcast %20 : vector<1x32xf32> to vector<16x32xf32>
      %22 = arith.mulf %19, %21 : vector<16x32xf32>
      %23 = arith.truncf %22 : vector<16x32xf32> to vector<16x32xbf16>
      %c0_13 = arith.constant 0 : index
      %c0_14 = arith.constant 0 : index
      %24 = vector.load %arg6[%c0_13, %c0_14] : memref<16x32xbf16, #tpu.memory_space<vmem>>, vector<16x32xbf16>
      tpu.vector_store %arg6[%c0_13, %c0_14], %23 {strides = array<i32>} : memref<16x32xbf16, #tpu.memory_space<vmem>>, vector<16x32xbf16>,
    } else {
    }
    %c0 = arith.constant 0 : index
    %c0_1 = arith.constant 0 : index
    %3 = vector.load %arg6[%c0, %c0_1] : memref<16x32xbf16, #tpu.memory_space<vmem>>, vector<16x32xbf16>
    %c0_2 = arith.constant 0 : index
    %c0_3 = arith.constant 0 : index
    %4 = vector.load %arg4[%c0_2, %c0_3] : memref<32x96xbf16, #tpu.memory_space<vmem>>, vector<32x96xbf16>
    %cst = arith.constant dense<0.000000e+00> : vector<16x96xf32>
    %5 = tpu.matmul %3, %4, %cst {dimension_numbers = #tpu.dot_dimension_numbers<[1], [0], [0], [1], [0, 0, 1, 1], [], []>} : vector<16x32xbf16>, vector<32x96xbf16>, vector<16x96xf32> -> vector<16x96xf32>
    %6 = arith.truncf %5 : vector<16x96xf32> to vector<16x96xbf16>
    %c0_4 = arith.constant 0 : index
    %c0_5 = arith.constant 0 : index
    %7 = vector.load %arg5[%c0_4, %c0_5] : memref<16x96xbf16, #tpu.memory_space<vmem>>, vector<16x96xbf16>
    tpu.vector_store %arg5[%c0_4, %c0_5], %6 {strides = array<i32>} : memref<16x96xbf16, #tpu.memory_space<vmem>>, vector<16x96xbf16>,
    return
  }
  func.func @transform_0(%arg0: i32, %arg1: i32) -> (i32, i32) {
    %c0_i32 = arith.constant 0 : i32
    %c0_i32_0 = arith.constant 0 : i32
    return %arg0, %c0_i32 : i32, i32
  }
  func.func @transform_1(%arg0: i32, %arg1: i32) -> (i32, i32) {
    %c0_i32 = arith.constant 0 : i32
    %c0_i32_0 = arith.constant 0 : i32
    %c0_i32_1 = arith.constant 0 : i32
    return %c0_i32, %c0_i32_0 : i32, i32
  }
  func.func @transform_2(%arg0: i32, %arg1: i32) -> (i32, i32) {
    %c0_i32 = arith.constant 0 : i32
    %c0_i32_0 = arith.constant 0 : i32
    return %c0_i32, %arg1 : i32, i32
  }
  func.func @transform_3(%arg0: i32, %arg1: i32) -> (i32, i32) {
    %c0_i32 = arith.constant 0 : i32
    return %arg0, %arg1 : i32, i32
  }
}

module attributes {stable_mosaic.version = 11 : i64} {
  func.func @_matmul_residual_kernel(%arg0: i32, %arg1: i32, %arg2: i32, %arg3: memref<16x32xbf16, #tpu.memory_space<vmem>>, %arg4: memref<32x32xbf16, #tpu.memory_space<vmem>>, %arg5: memref<16x32xbf16, #tpu.memory_space<vmem>>, %arg6: memref<16x32xbf16, #tpu.memory_space<vmem>>, %arg7: memref<16x32xf32, #tpu.memory_space<vmem>>) attributes {dimension_semantics = [#tpu.dimension_semantics<parallel>, #tpu.dimension_semantics<parallel>, #tpu.dimension_semantics<arbitrary>], iteration_bounds = array<i64: 1, 1, 1>, scalar_prefetch = 0 : i64, scratch_operands = 1 : i64, tpu.core_type = #tpu.core_type<tc>, window_params = [{transform_indices = @transform_0, window_bounds = array<i64: 16, 32>}, {transform_indices = @transform_1, window_bounds = array<i64: 32, 32>}, {transform_indices = @transform_2, window_bounds = array<i64: 16, 32>}, {transform_indices = @transform_3, window_bounds = array<i64: 16, 32>}]} {
    %c0_i32 = arith.constant 0 : i32
    %0 = arith.cmpi eq, %arg2, %c0_i32 : i32
    %1 = arith.extui %0 : i1 to i32
    %c0_i32_0 = arith.constant 0 : i32
    %2 = arith.cmpi ne, %1, %c0_i32_0 : i32
    scf.if %2 {
      %cst_10 = arith.constant 0.000000e+00 : f32
      %12 = vector.broadcast %cst_10 : f32 to vector<16x32xf32>
      %c0_11 = arith.constant 0 : index
      %c0_12 = arith.constant 0 : index
      %13 = vector.load %arg7[%c0_11, %c0_12] : memref<16x32xf32, #tpu.memory_space<vmem>>, vector<16x32xf32>
      tpu.vector_store %arg7[%c0_11, %c0_12], %12 {strides = array<i32>} : memref<16x32xf32, #tpu.memory_space<vmem>>, vector<16x32xf32>,
    } else {
    }
    %c0 = arith.constant 0 : index
    %c0_1 = arith.constant 0 : index
    %3 = vector.load %arg7[%c0, %c0_1] : memref<16x32xf32, #tpu.memory_space<vmem>>, vector<16x32xf32>
    %c0_2 = arith.constant 0 : index
    %c0_3 = arith.constant 0 : index
    %4 = vector.load %arg3[%c0_2, %c0_3] : memref<16x32xbf16, #tpu.memory_space<vmem>>, vector<16x32xbf16>
    %c0_4 = arith.constant 0 : index
    %c0_5 = arith.constant 0 : index
    %5 = vector.load %arg4[%c0_4, %c0_5] : memref<32x32xbf16, #tpu.memory_space<vmem>>, vector<32x32xbf16>
    %cst = arith.constant dense<0.000000e+00> : vector<16x32xf32>
    %6 = tpu.matmul %4, %5, %cst {dimension_numbers = #tpu.dot_dimension_numbers<[1], [0], [0], [1], [0, 0, 1, 1], [], []>} : vector<16x32xbf16>, vector<32x32xbf16>, vector<16x32xf32> -> vector<16x32xf32>
    %7 = arith.addf %3, %6 : vector<16x32xf32>
    %c0_6 = arith.constant 0 : index
    %c0_7 = arith.constant 0 : index
    %8 = vector.load %arg7[%c0_6, %c0_7] : memref<16x32xf32, #tpu.memory_space<vmem>>, vector<16x32xf32>
    tpu.vector_store %arg7[%c0_6, %c0_7], %7 {strides = array<i32>} : memref<16x32xf32, #tpu.memory_space<vmem>>, vector<16x32xf32>,
    %c0_i32_8 = arith.constant 0 : i32
    %9 = arith.cmpi eq, %arg2, %c0_i32_8 : i32
    %10 = arith.extui %9 : i1 to i32
    %c0_i32_9 = arith.constant 0 : i32
    %11 = arith.cmpi ne, %10, %c0_i32_9 : i32
    scf.if %11 {
      %c0_10 = arith.constant 0 : index
      %c0_11 = arith.constant 0 : index
      %12 = vector.load %arg5[%c0_10, %c0_11] : memref<16x32xbf16, #tpu.memory_space<vmem>>, vector<16x32xbf16>
      %13 = arith.extf %12 : vector<16x32xbf16> to vector<16x32xf32>
      %c0_12 = arith.constant 0 : index
      %c0_13 = arith.constant 0 : index
      %14 = vector.load %arg7[%c0_12, %c0_13] : memref<16x32xf32, #tpu.memory_space<vmem>>, vector<16x32xf32>
      %15 = arith.addf %13, %14 : vector<16x32xf32>
      %16 = arith.truncf %15 : vector<16x32xf32> to vector<16x32xbf16>
      %c0_14 = arith.constant 0 : index
      %c0_15 = arith.constant 0 : index
      %17 = vector.load %arg6[%c0_14, %c0_15] : memref<16x32xbf16, #tpu.memory_space<vmem>>, vector<16x32xbf16>
      tpu.vector_store %arg6[%c0_14, %c0_15], %16 {strides = array<i32>} : memref<16x32xbf16, #tpu.memory_space<vmem>>, vector<16x32xbf16>,
    } else {
    }
    return
  }
  func.func @transform_0(%arg0: i32, %arg1: i32, %arg2: i32) -> (i32, i32) {
    %c0_i32 = arith.constant 0 : i32
    return %arg0, %arg2 : i32, i32
  }
  func.func @transform_1(%arg0: i32, %arg1: i32, %arg2: i32) -> (i32, i32) {
    %c0_i32 = arith.constant 0 : i32
    return %arg2, %arg1 : i32, i32
  }
  func.func @transform_2(%arg0: i32, %arg1: i32, %arg2: i32) -> (i32, i32) {
    %c0_i32 = arith.constant 0 : i32
    return %arg0, %arg1 : i32, i32
  }
  func.func @transform_3(%arg0: i32, %arg1: i32, %arg2: i32) -> (i32, i32) {
    %c0_i32 = arith.constant 0 : i32
    return %arg0, %arg1 : i32, i32
  }
}

module attributes {stable_mosaic.version = 11 : i64} {
  func.func @_rmsnorm_ffn_kernel(%arg0: i32, %arg1: i32, %arg2: memref<16x32xbf16, #tpu.memory_space<vmem>>, %arg3: memref<1x32xf32, #tpu.memory_space<vmem>>, %arg4: memref<32x64xbf16, #tpu.memory_space<vmem>>, %arg5: memref<64x32xbf16, #tpu.memory_space<vmem>>, %arg6: memref<16x32xbf16, #tpu.memory_space<vmem>>, %arg7: memref<16x32xbf16, #tpu.memory_space<vmem>>, %arg8: memref<16x32xf32, #tpu.memory_space<vmem>>) attributes {dimension_semantics = [#tpu.dimension_semantics<parallel>, #tpu.dimension_semantics<arbitrary>], iteration_bounds = array<i64: 1, 1>, scalar_prefetch = 0 : i64, scratch_operands = 2 : i64, tpu.core_type = #tpu.core_type<tc>, window_params = [{transform_indices = @transform_0, window_bounds = array<i64: 16, 32>}, {pipeline_mode = #tpu.pipeline_mode<synchronous>, transform_indices = @transform_1, window_bounds = array<i64: 1, 32>}, {transform_indices = @transform_2, window_bounds = array<i64: 32, 64>}, {transform_indices = @transform_3, window_bounds = array<i64: 64, 32>}, {transform_indices = @transform_4, window_bounds = array<i64: 16, 32>}]} {
    %c0_i32 = arith.constant 0 : i32
    %0 = arith.cmpi eq, %arg1, %c0_i32 : i32
    %1 = arith.extui %0 : i1 to i32
    %c0_i32_0 = arith.constant 0 : i32
    %2 = arith.cmpi ne, %1, %c0_i32_0 : i32
    scf.if %2 {
      %c0_17 = arith.constant 0 : index
      %c0_18 = arith.constant 0 : index
      %28 = vector.load %arg2[%c0_17, %c0_18] : memref<16x32xbf16, #tpu.memory_space<vmem>>, vector<16x32xbf16>
      %29 = arith.extf %28 : vector<16x32xbf16> to vector<16x32xf32>
      %30 = arith.mulf %29, %29 : vector<16x32xf32>
      %cst_19 = arith.constant dense<0.000000e+00> : vector<16xf32>
      %31 = vector.multi_reduction <add>, %30, %cst_19 [1] : vector<16x32xf32> to vector<16xf32>
      %32 = vector.shape_cast %31 : vector<16xf32> to vector<16x1xf32>
      %cst_20 = arith.constant 3.200000e+01 : f32
      %33 = vector.broadcast %cst_20 : f32 to vector<16x1xf32>
      %34 = arith.divf %32, %33 : vector<16x1xf32>
      %cst_21 = arith.constant 9.99999974E-6 : f32
      %35 = vector.broadcast %cst_21 : f32 to vector<16x1xf32>
      %36 = arith.addf %34, %35 : vector<16x1xf32>
      %37 = math.rsqrt %36 : vector<16x1xf32>
      %38 = vector.broadcast %37 : vector<16x1xf32> to vector<16x32xf32>
      %39 = arith.mulf %29, %38 : vector<16x32xf32>
      %c0_22 = arith.constant 0 : index
      %c0_23 = arith.constant 0 : index
      %40 = vector.load %arg3[%c0_22, %c0_23] : memref<1x32xf32, #tpu.memory_space<vmem>>, vector<1x32xf32>
      %41 = vector.broadcast %40 : vector<1x32xf32> to vector<16x32xf32>
      %42 = arith.mulf %39, %41 : vector<16x32xf32>
      %43 = arith.truncf %42 : vector<16x32xf32> to vector<16x32xbf16>
      %c0_24 = arith.constant 0 : index
      %c0_25 = arith.constant 0 : index
      %44 = vector.load %arg7[%c0_24, %c0_25] : memref<16x32xbf16, #tpu.memory_space<vmem>>, vector<16x32xbf16>
      tpu.vector_store %arg7[%c0_24, %c0_25], %43 {strides = array<i32>} : memref<16x32xbf16, #tpu.memory_space<vmem>>, vector<16x32xbf16>,
      %cst_26 = arith.constant 0.000000e+00 : f32
      %45 = vector.broadcast %cst_26 : f32 to vector<16x32xf32>
      %c0_27 = arith.constant 0 : index
      %c0_28 = arith.constant 0 : index
      %46 = vector.load %arg8[%c0_27, %c0_28] : memref<16x32xf32, #tpu.memory_space<vmem>>, vector<16x32xf32>
      tpu.vector_store %arg8[%c0_27, %c0_28], %45 {strides = array<i32>} : memref<16x32xf32, #tpu.memory_space<vmem>>, vector<16x32xf32>,
    } else {
    }
    %c0 = arith.constant 0 : index
    %c0_1 = arith.constant 0 : index
    %3 = vector.load %arg7[%c0, %c0_1] : memref<16x32xbf16, #tpu.memory_space<vmem>>, vector<16x32xbf16>
    %c0_2 = arith.constant 0 : index
    %c0_3 = arith.constant 0 : index
    %4 = vector.load %arg4[%c0_2, %c0_3] : memref<32x64xbf16, #tpu.memory_space<vmem>>, vector<32x64xbf16>
    %cst = arith.constant dense<0.000000e+00> : vector<16x64xf32>
    %5 = tpu.matmul %3, %4, %cst {dimension_numbers = #tpu.dot_dimension_numbers<[1], [0], [0], [1], [0, 0, 1, 1], [], []>} : vector<16x32xbf16>, vector<32x64xbf16>, vector<16x64xf32> -> vector<16x64xf32>
    %cst_4 = arith.constant 5.000000e-01 : f32
    %6 = vector.broadcast %cst_4 : f32 to vector<16x64xf32>
    %7 = arith.mulf %6, %5 : vector<16x64xf32>
    %cst_5 = arith.constant 4.471500e-02 : f32
    %8 = vector.broadcast %cst_5 : f32 to vector<16x64xf32>
    %9 = arith.mulf %8, %5 : vector<16x64xf32>
    %10 = arith.mulf %9, %5 : vector<16x64xf32>
    %11 = arith.mulf %10, %5 : vector<16x64xf32>
    %12 = arith.addf %5, %11 : vector<16x64xf32>
    %cst_6 = arith.constant 0.797884583 : f32
    %13 = vector.broadcast %cst_6 : f32 to vector<16x64xf32>
    %14 = arith.mulf %13, %12 : vector<16x64xf32>
    %15 = math.tanh %14 : vector<16x64xf32>
    %cst_7 = arith.constant 1.000000e+00 : f32
    %16 = vector.broadcast %cst_7 : f32 to vector<16x64xf32>
    %17 = arith.addf %16, %15 : vector<16x64xf32>
    %18 = arith.mulf %7, %17 : vector<16x64xf32>
    %c0_8 = arith.constant 0 : index
    %c0_9 = arith.constant 0 : index
    %19 = vector.load %arg8[%c0_8, %c0_9] : memref<16x32xf32, #tpu.memory_space<vmem>>, vector<16x32xf32>
    %20 = arith.truncf %18 : vector<16x64xf32> to vector<16x64xbf16>
    %c0_10 = arith.constant 0 : index
    %c0_11 = arith.constant 0 : index
    %21 = vector.load %arg5[%c0_10, %c0_11] : memref<64x32xbf16, #tpu.memory_space<vmem>>, vector<64x32xbf16>
    %cst_12 = arith.constant dense<0.000000e+00> : vector<16x32xf32>
    %22 = tpu.matmul %20, %21, %cst_12 {dimension_numbers = #tpu.dot_dimension_numbers<[1], [0], [0], [1], [0, 0, 1, 1], [], []>} : vector<16x64xbf16>, vector<64x32xbf16>, vector<16x32xf32> -> vector<16x32xf32>
    %23 = arith.addf %19, %22 : vector<16x32xf32>
    %c0_13 = arith.constant 0 : index
    %c0_14 = arith.constant 0 : index
    %24 = vector.load %arg8[%c0_13, %c0_14] : memref<16x32xf32, #tpu.memory_space<vmem>>, vector<16x32xf32>
    tpu.vector_store %arg8[%c0_13, %c0_14], %23 {strides = array<i32>} : memref<16x32xf32, #tpu.memory_space<vmem>>, vector<16x32xf32>,
    %c0_i32_15 = arith.constant 0 : i32
    %25 = arith.cmpi eq, %arg1, %c0_i32_15 : i32
    %26 = arith.extui %25 : i1 to i32
    %c0_i32_16 = arith.constant 0 : i32
    %27 = arith.cmpi ne, %26, %c0_i32_16 : i32
    scf.if %27 {
      %c0_17 = arith.constant 0 : index
      %c0_18 = arith.constant 0 : index
      %28 = vector.load %arg2[%c0_17, %c0_18] : memref<16x32xbf16, #tpu.memory_space<vmem>>, vector<16x32xbf16>
      %29 = arith.extf %28 : vector<16x32xbf16> to vector<16x32xf32>
      %c0_19 = arith.constant 0 : index
      %c0_20 = arith.constant 0 : index
      %30 = vector.load %arg8[%c0_19, %c0_20] : memref<16x32xf32, #tpu.memory_space<vmem>>, vector<16x32xf32>
      %31 = arith.addf %29, %30 : vector<16x32xf32>
      %32 = arith.truncf %31 : vector<16x32xf32> to vector<16x32xbf16>
      %c0_21 = arith.constant 0 : index
      %c0_22 = arith.constant 0 : index
      %33 = vector.load %arg6[%c0_21, %c0_22] : memref<16x32xbf16, #tpu.memory_space<vmem>>, vector<16x32xbf16>
      tpu.vector_store %arg6[%c0_21, %c0_22], %32 {strides = array<i32>} : memref<16x32xbf16, #tpu.memory_space<vmem>>, vector<16x32xbf16>,
    } else {
    }
    return
  }
  func.func @transform_0(%arg0: i32, %arg1: i32) -> (i32, i32) {
    %c0_i32 = arith.constant 0 : i32
    %c0_i32_0 = arith.constant 0 : i32
    return %arg0, %c0_i32 : i32, i32
  }
  func.func @transform_1(%arg0: i32, %arg1: i32) -> (i32, i32) {
    %c0_i32 = arith.constant 0 : i32
    %c0_i32_0 = arith.constant 0 : i32
    %c0_i32_1 = arith.constant 0 : i32
    return %c0_i32, %c0_i32_0 : i32, i32
  }
  func.func @transform_2(%arg0: i32, %arg1: i32) -> (i32, i32) {
    %c0_i32 = arith.constant 0 : i32
    %c0_i32_0 = arith.constant 0 : i32
    return %c0_i32, %arg1 : i32, i32
  }
  func.func @transform_3(%arg0: i32, %arg1: i32) -> (i32, i32) {
    %c0_i32 = arith.constant 0 : i32
    %c0_i32_0 = arith.constant 0 : i32
    return %arg1, %c0_i32 : i32, i32
  }
  func.func @transform_4(%arg0: i32, %arg1: i32) -> (i32, i32) {
    %c0_i32 = arith.constant 0 : i32
    %c0_i32_0 = arith.constant 0 : i32
    return %arg0, %c0_i32 : i32, i32
  }
}

module attributes {stable_mosaic.version = 11 : i64} {
  func.func @_rmsnorm_matmul_kernel(%arg0: i32, %arg1: i32, %arg2: memref<16x32xbf16, #tpu.memory_space<vmem>>, %arg3: memref<1x32xf32, #tpu.memory_space<vmem>>, %arg4: memref<32x64xbf16, #tpu.memory_space<vmem>>, %arg5: memref<16x64xf32, #tpu.memory_space<vmem>>, %arg6: memref<16x32xbf16, #tpu.memory_space<vmem>>) attributes {dimension_semantics = [#tpu.dimension_semantics<parallel>, #tpu.dimension_semantics<arbitrary>], iteration_bounds = array<i64: 1, 1>, scalar_prefetch = 0 : i64, scratch_operands = 1 : i64, tpu.core_type = #tpu.core_type<tc>, window_params = [{transform_indices = @transform_0, window_bounds = array<i64: 16, 32>}, {pipeline_mode = #tpu.pipeline_mode<synchronous>, transform_indices = @transform_1, window_bounds = array<i64: 1, 32>}, {transform_indices = @transform_2, window_bounds = array<i64: 32, 64>}, {transform_indices = @transform_3, window_bounds = array<i64: 16, 64>}]} {
    %c0_i32 = arith.constant 0 : i32
    %0 = arith.cmpi eq, %arg1, %c0_i32 : i32
    %1 = arith.extui %0 : i1 to i32
    %c0_i32_0 = arith.constant 0 : i32
    %2 = arith.cmpi ne, %1, %c0_i32_0 : i32
    scf.if %2 {
      %c0_6 = arith.constant 0 : index
      %c0_7 = arith.constant 0 : index
      %7 = vector.load %arg2[%c0_6, %c0_7] : memref<16x32xbf16, #tpu.memory_space<vmem>>, vector<16x32xbf16>
      %8 = arith.extf %7 : vector<16x32xbf16> to vector<16x32xf32>
      %9 = arith.mulf %8, %8 : vector<16x32xf32>
      %cst_8 = arith.constant dense<0.000000e+00> : vector<16xf32>
      %10 = vector.multi_reduction <add>, %9, %cst_8 [1] : vector<16x32xf32> to vector<16xf32>
      %11 = vector.shape_cast %10 : vector<16xf32> to vector<16x1xf32>
      %cst_9 = arith.constant 3.200000e+01 : f32
      %12 = vector.broadcast %cst_9 : f32 to vector<16x1xf32>
      %13 = arith.divf %11, %12 : vector<16x1xf32>
      %cst_10 = arith.constant 9.99999974E-6 : f32
      %14 = vector.broadcast %cst_10 : f32 to vector<16x1xf32>
      %15 = arith.addf %13, %14 : vector<16x1xf32>
      %16 = math.rsqrt %15 : vector<16x1xf32>
      %17 = vector.broadcast %16 : vector<16x1xf32> to vector<16x32xf32>
      %18 = arith.mulf %8, %17 : vector<16x32xf32>
      %c0_11 = arith.constant 0 : index
      %c0_12 = arith.constant 0 : index
      %19 = vector.load %arg3[%c0_11, %c0_12] : memref<1x32xf32, #tpu.memory_space<vmem>>, vector<1x32xf32>
      %20 = vector.broadcast %19 : vector<1x32xf32> to vector<16x32xf32>
      %21 = arith.mulf %18, %20 : vector<16x32xf32>
      %22 = arith.truncf %21 : vector<16x32xf32> to vector<16x32xbf16>
      %c0_13 = arith.constant 0 : index
      %c0_14 = arith.constant 0 : index
      %23 = vector.load %arg6[%c0_13, %c0_14] : memref<16x32xbf16, #tpu.memory_space<vmem>>, vector<16x32xbf16>
      tpu.vector_store %arg6[%c0_13, %c0_14], %22 {strides = array<i32>} : memref<16x32xbf16, #tpu.memory_space<vmem>>, vector<16x32xbf16>,
    } else {
    }
    %c0 = arith.constant 0 : index
    %c0_1 = arith.constant 0 : index
    %3 = vector.load %arg6[%c0, %c0_1] : memref<16x32xbf16, #tpu.memory_space<vmem>>, vector<16x32xbf16>
    %c0_2 = arith.constant 0 : index
    %c0_3 = arith.constant 0 : index
    %4 = vector.load %arg4[%c0_2, %c0_3] : memref<32x64xbf16, #tpu.memory_space<vmem>>, vector<32x64xbf16>
    %cst = arith.constant dense<0.000000e+00> : vector<16x64xf32>
    %5 = tpu.matmul %3, %4, %cst {dimension_numbers = #tpu.dot_dimension_numbers<[1], [0], [0], [1], [0, 0, 1, 1], [], []>} : vector<16x32xbf16>, vector<32x64xbf16>, vector<16x64xf32> -> vector<16x64xf32>
    %c0_4 = arith.constant 0 : index
    %c0_5 = arith.constant 0 : index
    %6 = vector.load %arg5[%c0_4, %c0_5] : memref<16x64xf32, #tpu.memory_space<vmem>>, vector<16x64xf32>
    tpu.vector_store %arg5[%c0_4, %c0_5], %5 {strides = array<i32>} : memref<16x64xf32, #tpu.memory_space<vmem>>, vector<16x64xf32>,
    return
  }
  func.func @transform_0(%arg0: i32, %arg1: i32) -> (i32, i32) {
    %c0_i32 = arith.constant 0 : i32
    %c0_i32_0 = arith.constant 0 : i32
    return %arg0, %c0_i32 : i32, i32
  }
  func.func @transform_1(%arg0: i32, %arg1: i32) -> (i32, i32) {
    %c0_i32 = arith.constant 0 : i32
    %c0_i32_0 = arith.constant 0 : i32
    %c0_i32_1 = arith.constant 0 : i32
    return %c0_i32, %c0_i32_0 : i32, i32
  }
  func.func @transform_2(%arg0: i32, %arg1: i32) -> (i32, i32) {
    %c0_i32 = arith.constant 0 : i32
    %c0_i32_0 = arith.constant 0 : i32
    return %c0_i32, %arg1 : i32, i32
  }
  func.func @transform_3(%arg0: i32, %arg1: i32) -> (i32, i32) {
    %c0_i32 = arith.constant 0 : i32
    return %arg0, %arg1 : i32, i32
  }
}

</mosaic_0001>

<bundles_post_ra>
// kernel: _lambda_.11
= control target key start
LH: loop header
LB: loop body
LE: loop exit
PB: predicated region body
PF: predicated region fallthrough
CT: control target
= control target key end

     0   :  { %vm19_vm0 = vcmask 261120   ;;  %v110_v1 = vmov 0.0   ;;  %vm82_vm1 = vcmask 257024   ;;  %s154_s1 = inlined_call_operand.vmem [shape: bf16[32,32], index: 1, kind: input, shape index: {}]   ;;  %s155_s0 = inlined_call_operand.vmem [shape: bf16[16,32], index: 0, kind: input, shape index: {}]   ;;  %s156_s2 = inlined_call_operand.vmem [shape: bf16[16,32], index: 2, kind: input, shape index: {}]   ;;  %s157_s3 = inlined_call_operand.vmem [shape: bf16[16,32], index: 3, kind: output, shape index: {}]  }
   0x1   :  { %v104_v0 = vld [vmem:[%s154_s1 + $0x8] sm:$0xff]  ;;  %20 = vst.msk [vmem:[#allocation2] sm:$0xff] %vm19_vm0, %v110_v1  ;;  %v103_v2 = vld [vmem:[%s154_s1] sm:$0xff] }
   0x2   :  { %21 = vst.msk [vmem:[#allocation2 + $0x8] sm:$0xff] %vm19_vm0, %v110_v1  ;;  %57 = vmatpush.bf16.msra.mxu0 %v104_v0  ;;  %v102_v3 = vld [vmem:[%s155_s0] sm:$0xff] }
   0x3   :  { %v106_v7 = vld [vmem:[%s156_s2] sm:$0xff]  }
   0x4   :  { %v107_v9 = vunpack.c.l.bf16 %v106_v7  ;;  %v108_v15 = vunpack.c.h.bf16 %v106_v7 }
   0x6   :  { %58 = vmatpush.bf16.msra.mxu0 %v103_v2 }
   0x8   :  { %v22_v4 = vld [vmem:[#allocation2] sm:$0xff] }
   0x9   :  { %101 = vmatmul.msk.bf16.vlgmr.msra.gmra.mxu0 %vm19_vm0, %v102_v3  ;;  %v23_v8 = vld [vmem:[#allocation2 + $0x8] sm:$0xff] }
  0x86   :  { %v60_v5 = vpop.f32.mrf.mxu0 }
  0x87   :  { %v65_v6 = vadd.f32 %v60_v5, %v22_v4 }
  0x89   :  { %67 = vst.msk [vmem:[#allocation2] sm:$0xff] %vm19_vm0, %v65_v6 }
  0x8e   :  { %v62_v10 = vpop.f32.mrf.mxu0 }
  0x8f   :  { %v66_v11 = vadd.f32 %v62_v10, %v23_v8 }
  0x90   :  { %v76_v12 = vld [vmem:[#allocation2] sm:$0xff] }
  0x91   :  { %v78_v13 = vadd.f32 %v107_v9, %v76_v12  ;;  %68 = vst.msk [vmem:[#allocation2 + $0x8] sm:$0xff] %vm19_vm0, %v66_v11 }
  0x93   :  { %v80_v14 = vpack.c.bf16 %v78_v13, %v78_v13 }
  0x95   :  { %83 = vst.msk [vmem:[%s157_s3] sm:$0xf] %vm82_vm1, %v80_v14 }
  0x98   :  { %v77_v16 = vld [vmem:[#allocation2 + $0x8] sm:$0xff] }
  0x99   :  { %v79_v17 = vadd.f32 %v108_v15, %v77_v16 }
  0x9b   :  { %v81_v18 = vpack.c.bf16 %v79_v17, %v79_v17 }
  0x9d   :  { %84 = vst.msk [vmem:[%s157_s3 + $0x4] sm:$0xf] %vm82_vm1, %v81_v18 }

// kernel: _lambda_.9
= control target key start
LH: loop header
LB: loop body
LE: loop exit
PB: predicated region body
PF: predicated region fallthrough
CT: control target
= control target key end

     0   :  { %vm25_vm0 = vcmask 261120   ;;  %v154_v7 = vmov 32.0   ;;  %vm73_vm5 = vcmask 257024   ;;  %vm119_vm9 = vcmask 781312   ;;  %s196_s0 = inlined_call_operand.vmem [shape: bf16[16,32], index: 0, kind: input, shape index: {}]   ;;  %s197_s1 = inlined_call_operand.vmem [shape: f32[1,32], index: 1, kind: input, shape index: {}]   ;;  %s198_s2 = inlined_call_operand.vmem [shape: bf16[32,96], index: 2, kind: input, shape index: {}]   ;;  %s199_s3 = inlined_call_operand.vmem [shape: bf16[16,96], index: 3, kind: output, shape index: {}]  }
   0x1   :  { %v143_v0 = vld [vmem:[%s196_s0] sm:$0xff]   ;;  %148 = vrcp.f32 %v154_v7  ;;  %v141_v17 = vld [vmem:[%s198_s2 + $0x8] sm:$0xff] }
   0x2   :  { %v144_v1 = vunpack.c.l.bf16 %v143_v0  ;;  %v145_v3 = vunpack.c.h.bf16 %v143_v0  ;;  %109 = vmatpush.bf16.msra.mxu0 %v141_v17  ;;  %v140_v18 = vld [vmem:[%s198_s2] sm:$0xff] }
   0x3   :  { %v147_v30 = vld [vmem:[%s197_s1] ss:$0 sm:$0xff] }
   0x4   :  { %v23_v2 = vmul.f32 %v144_v1, %v144_v1  ;;  %v24_v5 = vmul.f32 %v145_v3, %v145_v3 }
   0x6   :  { %v26_v4 = vsel %vm25_vm0, %v23_v2, 0.0  ;;  %v29_v6 = vsel %vm25_vm0, %v24_v5, 0.0  ;;  %110 = vmatpush.bf16.msra.mxu0 %v140_v18 }
   0x7   :  { %27 = vadd.xlane.f32.xlu0 %v26_v4  ;;  %v149_v8 = vpop.eup %148 }
   0x8   :  { %v33_v9 = vmul.f32 32.0, %v149_v8  ;;  %vm37_vm1 = vweird.f32 %v149_v8 }
   0xa   :  { %v34_v10 = vsub.f32 1.0, %v33_v9 }
   0xc   :  { %v35_v11 = vmul.f32 %v149_v8, %v34_v10 }
   0xe   :  { %v36_v12 = vadd.f32 %v149_v8, %v35_v11 }
   0xf   :  { %30 = vadd.xlane.f32.xlu0 %v29_v6 }
  0x10   :  { %v38_v13 = vsel %vm37_vm1, %v149_v8, %v36_v12 }
  0x7a   :  { %v28_v14 = vpop.xlane.xlu0 %27 }
  0x7b   :  { %v39_v15 = vmul.f32 %v38_v13, %v28_v14 }
  0x7d   :  { %v41_v16 = vadd.f32 1e-05, %v39_v15 }
  0x7f   :  { %150 = vrsqrt.f32 %v41_v16  ;;  %vm49_vm3 = vweird.f32 %v41_v16 }
  0x82   :  { %v31_v19 = vpop.xlane.xlu0 %30 }
  0x83   :  { %v40_v20 = vmul.f32 %v38_v13, %v31_v19 }
  0x85   :  { %v151_v21 = vpop.eup %150  ;;  %v42_v22 = vadd.f32 1e-05, %v40_v20 }
  0x86   :  { %v44_v23 = vmul.f32 %v151_v21, %v41_v16  ;;  %vm50_vm2 = vweird.f32 %v151_v21 }
  0x87   :  { %152 = vrsqrt.f32 %v42_v22  ;;  %vm51_vm4 = vmor %vm49_vm3, %vm50_vm2  ;;  %vm59_vm7 = vweird.f32 %v42_v22 }
  0x88   :  { %v45_v24 = vmul.f32 %v151_v21, %v44_v23 }
  0x8a   :  { %v46_v25 = vmul.f32 0.5, %v45_v24 }
  0x8c   :  { %v47_v26 = vsub.f32 1.5, %v46_v25 }
  0x8d   :  { %v153_v27 = vpop.eup %152 }
  0x8e   :  { %v48_v28 = vmul.f32 %v151_v21, %v47_v26  ;;  %v54_v29 = vmul.f32 %v153_v27, %v42_v22  ;;  %vm60_vm6 = vweird.f32 %v153_v27 }
  0x8f   :  { %vm61_vm8 = vmor %vm59_vm7, %vm60_vm6 }
  0x90   :  { %v52_v31 = vsel %vm51_vm4, %v151_v21, %v48_v28  ;;  %v55_v32 = vmul.f32 %v153_v27, %v54_v29 }
  0x91   :  { %v63_v33 = vmul.f32 %v144_v1, %v52_v31 }
  0x92   :  { %v56_v34 = vmul.f32 0.5, %v55_v32 }
  0x93   :  { %v69_v35 = vmul.f32 %v147_v30, %v63_v33 }
  0x94   :  { %v57_v36 = vsub.f32 1.5, %v56_v34 }
  0x95   :  { %v71_v37 = vpack.c.bf16 %v69_v35, %v69_v35 }
  0x96   :  { %v58_v38 = vmul.f32 %v153_v27, %v57_v36 }
  0x97   :  { %74 = vst.msk [vmem:[#allocation2] sm:$0xf] %vm73_vm5, %v71_v37 }
  0x98   :  { %v62_v39 = vsel %vm61_vm8, %v153_v27, %v58_v38 }
  0x99   :  { %v64_v40 = vmul.f32 %v145_v3, %v62_v39 }
  0x9b   :  { %v70_v41 = vmul.f32 %v147_v30, %v64_v40 }
  0x9d   :  { %v72_v42 = vpack.c.bf16 %v70_v41, %v70_v41 }
  0x9f   :  { %75 = vst.msk [vmem:[#allocation2 + $0x4] sm:$0xf] %vm73_vm5, %v72_v42 }
  0xa6   :  { %v139_v43 = vld [vmem:[#allocation2] sm:$0xff] }
  0xa7   :  { %138 = vmatmul.msk.bf16.vlgmr.msra.gmra.mxu0 %vm25_vm0, %v139_v43 }
 0x124   :  { %v112_v44 = vpop.f32.mrf.mxu0 }
 0x125   :  { %v117_v45 = vpack.c.bf16 %v112_v44, %v112_v44 }
 0x127   :  { %120 = vst.msk [vmem:[%s199_s3] sm:$0xf] %vm119_vm9, %v117_v45 }
 0x12c   :  { %v114_v46 = vpop.f32.mrf.mxu0 }
 0x12d   :  { %v118_v47 = vpack.c.bf16 %v114_v46, %v114_v46 }
 0x12f   :  { %121 = vst.msk [vmem:[%s199_s3 + $0x4] sm:$0xf] %vm119_vm9, %v118_v47 }

// kernel: _lambda_.12
= control target key start
LH: loop header
LB: loop body
LE: loop exit
PB: predicated region body
PF: predicated region fallthrough
CT: control target
= control target key end

     0   :  { %vm28_vm0 = vcmask 261120   ;;  %v275_v7 = vmov 32.0   ;;  %vm76_vm5 = vcmask 257024   ;;  %v276_v50 = vmov 0.0   ;;  %s355_s0 = inlined_call_operand.vmem [shape: bf16[16,32], index: 0, kind: input, shape index: {}]   ;;  %s356_s1 = inlined_call_operand.vmem [shape: f32[1,32], index: 1, kind: input, shape index: {}]   ;;  %s357_s2 = inlined_call_operand.vmem [shape: bf16[32,64], index: 2, kind: input, shape index: {}]   ;;  %s358_s3 = inlined_call_operand.vmem [shape: bf16[64,32], index: 3, kind: input, shape index: {}]   ;;  %s359_s4 = inlined_call_operand.vmem [shape: bf16[16,32], index: 4, kind: output, shape index: {}]  }
   0x1   :  { %v255_v0 = vld [vmem:[%s355_s0] sm:$0xff]   ;;  %265 = vrcp.f32 %v275_v7  ;;  %v249_v17 = vld [vmem:[%s357_s2 + $0x8] sm:$0xff]  ;;  %v253_v44 = vld [vmem:[%s358_s3 + $0x18] sm:$0xff]  ;;  %79 = vst.msk [vmem:[#allocation3] sm:$0xff] %vm28_vm0, %v276_v50  ;;  %vm175_vm9 = vcmask 523264  }
   0x2   :  { %v305_v1 = vunpack.c.l.bf16 %v255_v0  ;;  %v309_v3 = vunpack.c.h.bf16 %v255_v0  ;;  %114 = vmatpush.bf16.msra.mxu0 %v249_v17  ;;  %v248_v18 = vld [vmem:[%s357_s2] sm:$0xff]  ;;  %183 = vmatpush.bf16.msra.mxu1 %v253_v44  ;;  %v252_v45 = vld [vmem:[%s358_s3 + $0x10] sm:$0xff]  ;;  %v251_v46 = vld [vmem:[%s358_s3 + $0x8] sm:$0xff]  ;;  %80 = vst.msk [vmem:[#allocation3 + $0x8] sm:$0xff] %vm28_vm0, %v276_v50 }
   0x3   :  { %v264_v30 = vld [vmem:[%s356_s1] ss:$0 sm:$0xff] }
   0x4   :  { %v26_v2 = vmul.f32 %v305_v1, %v305_v1  ;;  %v27_v5 = vmul.f32 %v309_v3, %v309_v3  ;;  %v250_v47 = vld [vmem:[%s358_s3] sm:$0xff] }
   0x6   :  { %v29_v4 = vsel %vm28_vm0, %v26_v2, 0.0  ;;  %v32_v6 = vsel %vm28_vm0, %v27_v5, 0.0  ;;  %115 = vmatpush.bf16.msra.mxu0 %v248_v18  ;;  %184 = vmatpush.bf16.msra.mxu1 %v252_v45 }
   0x7   :  { %30 = vadd.xlane.f32.xlu0 %v29_v4  ;;  %v266_v8 = vpop.eup %265 }
   0x8   :  { %v36_v9 = vmul.f32 32.0, %v266_v8  ;;  %vm40_vm1 = vweird.f32 %v266_v8 }
   0xa   :  { %v37_v10 = vsub.f32 1.0, %v36_v9  ;;  %185 = vmatpush.bf16.msra.mxu1 %v251_v46 }
   0xc   :  { %v38_v11 = vmul.f32 %v266_v8, %v37_v10 }
   0xe   :  { %v39_v12 = vadd.f32 %v266_v8, %v38_v11  ;;  %186 = vmatpush.bf16.msra.mxu1 %v250_v47  ;;  %v141_v11 = vld [vmem:[#allocation3 + $0x8] sm:$0xff] }
   0xf   :  { %33 = vadd.xlane.f32.xlu0 %v32_v6 }
  0x10   :  { %v41_v13 = vsel %vm40_vm1, %v266_v8, %v39_v12  ;;  %v140_v8 = vld [vmem:[#allocation3] sm:$0xff] }
  0x7a   :  { %v31_v14 = vpop.xlane.xlu0 %30 }
  0x7b   :  { %v42_v15 = vmul.f32 %v41_v13, %v31_v14 }
  0x7d   :  { %v44_v16 = vadd.f32 1e-05, %v42_v15 }
  0x7f   :  { %267 = vrsqrt.f32 %v44_v16  ;;  %vm52_vm3 = vweird.f32 %v44_v16 }
  0x82   :  { %v34_v19 = vpop.xlane.xlu0 %33 }
  0x83   :  { %v43_v20 = vmul.f32 %v41_v13, %v34_v19 }
  0x85   :  { %v268_v21 = vpop.eup %267  ;;  %v45_v22 = vadd.f32 1e-05, %v43_v20 }
  0x86   :  { %v47_v23 = vmul.f32 %v268_v21, %v44_v16  ;;  %vm53_vm2 = vweird.f32 %v268_v21 }
  0x87   :  { %269 = vrsqrt.f32 %v45_v22  ;;  %vm54_vm4 = vmor %vm52_vm3, %vm53_vm2  ;;  %vm62_vm7 = vweird.f32 %v45_v22 }
  0x88   :  { %v48_v24 = vmul.f32 %v268_v21, %v47_v23 }
  0x8a   :  { %v49_v25 = vmul.f32 0.5, %v48_v24 }
  0x8c   :  { %v50_v26 = vsub.f32 1.5, %v49_v25 }
  0x8d   :  { %v270_v27 = vpop.eup %269 }
  0x8e   :  { %v51_v28 = vmul.f32 %v268_v21, %v50_v26  ;;  %v57_v29 = vmul.f32 %v270_v27, %v45_v22  ;;  %vm63_vm6 = vweird.f32 %v270_v27 }
  0x8f   :  { %vm64_vm8 = vmor %vm62_vm7, %vm63_vm6 }
  0x90   :  { %v55_v31 = vsel %vm54_vm4, %v268_v21, %v51_v28  ;;  %v58_v32 = vmul.f32 %v270_v27, %v57_v29 }
  0x91   :  { %v66_v33 = vmul.f32 %v305_v1, %v55_v31 }
  0x92   :  { %v59_v34 = vmul.f32 0.5, %v58_v32 }
  0x93   :  { %v72_v35 = vmul.f32 %v264_v30, %v66_v33 }
  0x94   :  { %v60_v36 = vsub.f32 1.5, %v59_v34 }
  0x95   :  { %v74_v37 = vpack.c.bf16 %v72_v35, %v72_v35 }
  0x96   :  { %v61_v38 = vmul.f32 %v270_v27, %v60_v36 }
  0x97   :  { %77 = vst.msk [vmem:[#allocation2] sm:$0xf] %vm76_vm5, %v74_v37 }
  0x98   :  { %v65_v39 = vsel %vm64_vm8, %v270_v27, %v61_v38 }
  0x99   :  { %v67_v40 = vmul.f32 %v309_v3, %v65_v39 }
  0x9b   :  { %v73_v41 = vmul.f32 %v264_v30, %v67_v40 }
  0x9d   :  { %v75_v42 = vpack.c.bf16 %v73_v41, %v73_v41 }
  0x9f   :  { %78 = vst.msk [vmem:[#allocation2 + $0x4] sm:$0xf] %vm76_vm5, %v75_v42 }
  0xa6   :  { %v247_v43 = vld [vmem:[#allocation2] sm:$0xff] }
  0xa7   :  { %229 = vmatmul.msk.bf16.vlgmr.msra.gmra.mxu0 %vm28_vm0, %v247_v43 }
 0x124   :  { %v117_v48 = vpop.f32.mrf.mxu0 }
 0x125   :  { %v124_v49 = vmul.f32 0.044715, %v117_v48  ;;  %v122_v2 = vmul.f32 0.5, %v117_v48 }
 0x127   :  { %v126_v51 = vmul.f32 %v124_v49, %v117_v48 }
 0x129   :  { %v128_v52 = vmul.f32 %v126_v51, %v117_v48 }
 0x12b   :  { %v130_v53 = vadd.f32 %v128_v52, %v117_v48 }
 0x12c   :  { %v119_v54 = vpop.f32.mrf.mxu0 }
 0x12d   :  { %v125_v55 = vmul.f32 0.044715, %v119_v54  ;;  %v132_v56 = vmul.f32 0.7978846, %v130_v53  ;;  %v123_v0 = vmul.f32 0.5, %v119_v54 }
 0x12f   :  { %v127_v57 = vmul.f32 %v125_v55, %v119_v54  ;;  %271 = vtanh.f32 %v132_v56 }
 0x131   :  { %v129_v58 = vmul.f32 %v127_v57, %v119_v54 }
 0x133   :  { %v131_v59 = vadd.f32 %v129_v58, %v119_v54 }
 0x135   :  { %v133_v60 = vmul.f32 0.7978846, %v131_v59  ;;  %v272_v61 = vpop.eup %271 }
 0x136   :  { %v136_v62 = vadd.f32 1.0, %v272_v61 }
 0x137   :  { %273 = vtanh.f32 %v133_v60 }
 0x138   :  { %v138_v5 = vmul.f32 %v136_v62, %v122_v2 }
 0x13d   :  { %v274_v63 = vpop.eup %273 }
 0x13e   :  { %v137_v4 = vadd.f32 1.0, %v274_v63 }
 0x140   :  { %v139_v6 = vmul.f32 %v137_v4, %v123_v0 }
 0x142   :  { %v142_v7 = vpack.c.bf16 %v139_v6, %v138_v5 }
 0x144   :  { %246 = vmatmul.msk.bf16.vlgmr.msra.gmra.mxu1 %vm175_vm9, %v142_v7 }
 0x1c1   :  { %v188_v9 = vpop.f32.mrf.mxu1 }
 0x1c2   :  { %v193_v10 = vadd.f32 %v188_v9, %v140_v8 }
 0x1c4   :  { %195 = vst.msk [vmem:[#allocation3] sm:$0xff] %vm28_vm0, %v193_v10 }
 0x1c9   :  { %v190_v12 = vpop.f32.mrf.mxu1 }
 0x1ca   :  { %v194_v13 = vadd.f32 %v190_v12, %v141_v11 }
 0x1cb   :  { %v204_v14 = vld [vmem:[#allocation3] sm:$0xff] }
 0x1cc   :  { %v206_v15 = vadd.f32 %v305_v1, %v204_v14  ;;  %196 = vst.msk [vmem:[#allocation3 + $0x8] sm:$0xff] %vm28_vm0, %v194_v13 }
 0x1ce   :  { %v208_v16 = vpack.c.bf16 %v206_v15, %v206_v15 }
 0x1d0   :  { %211 = vst.msk [vmem:[%s359_s4] sm:$0xf] %vm76_vm5, %v208_v16 }
 0x1d3   :  { %v205_v17 = vld [vmem:[#allocation3 + $0x8] sm:$0xff] }
 0x1d4   :  { %v207_v18 = vadd.f32 %v309_v3, %v205_v17 }
 0x1d6   :  { %v209_v19 = vpack.c.bf16 %v207_v18, %v207_v18 }
 0x1d8   :  { %212 = vst.msk [vmem:[%s359_s4 + $0x4] sm:$0xf] %vm76_vm5, %v209_v19 }

// kernel: _lambda_.10
= control target key start
LH: loop header
LB: loop body
LE: loop exit
PB: predicated region body
PF: predicated region fallthrough
CT: control target
= control target key end

     0   :  { %s1426_s12 = smov 0   ;;  %s1428_s13 = smov 0   ;;  %s1831_s0 = inlined_call_operand.vmem [shape: bf16[2,8,3,2,16], index: 0, kind: input, shape index: {}, may-alias: {0,1,2}]   ;;  %s1832_s1 = inlined_call_operand.vmem [shape: bf16[2,8,3,2,16], index: 1, kind: input, shape index: {}, may-alias: {0,1,2}]   ;;  %s1833_s2 = inlined_call_operand.vmem [shape: bf16[2,8,3,2,16], index: 2, kind: input, shape index: {}, may-alias: {0,1,2}]   ;;  %s1834_s3 = inlined_call_operand.vmem [shape: bf16[2,8,2,16], index: 3, kind: output, shape index: {}]  }
   0x1   :  { %s1430_s14 = smov 0   ;;  %s1432_s15 = smov 0  }
   0x2   :  { %s1434_s16 = smov 0  }
   0x3 LB: > { %s32_s17 = sadd.s32 1, %s1397_s15  ;;  %p48_p1 = scmp.ne.s32.totalorder %s1389_s13, %s1385_s12  ;;  %s1401_s16 = sphi %s1434_s16, %s13_s16   ;;  %s1397_s15 = sphi %s1432_s15, %s1843_s15   ;;  %s1393_s14 = sphi %s1430_s14, %s1842_s14   ;;  %s1389_s13 = sphi %s1428_s13, %s1841_s13   ;;  %s1385_s12 = sphi %s1426_s12, %s1840_s12  }
   0x4   : > { %p34_p0 = scmp.ge.s32.totalorder %s32_s17, 2  ;;  %p49_p2 = scmp.eq.s32.totalorder %s1401_s16, 0 }
   0x5   : > { %s41_s20 = sadd.s32 1, %s1389_s13  ;;  %p1265_p5 = scmp.ge.s32.totalorder %s1401_s16, 2 }
   0x6   : > { %s1845_s17 = smov (%p34_p0, %s32_s17), 0  ;;  %p1457_p3 = por %p49_p2, %p48_p1 }
   0x7   : > { %s36_s19 = ssub.s32 %s1397_s15, %s1845_s17  ;;  %166 = sbr.rel (%p1265_p5) target bundleno = 51 (0x33), region = 16 }
   0x8   : > { %p39_p4 = scmp.eq.s32.totalorder %s36_s19, 0 }
   0xa   : > { %s1465_s21 = scalar_select %p39_p4, %s1389_s13, %s41_s20  }
   0xc   : > { %169 = sbr.rel (!%p1457_p3) target bundleno = 25 (0x19), region = 20  ;;  %s171_s22 = sand.u32 (%p1457_p3), 1, %s1389_s13  }
   0xd   : > { %s1304_s23 = smul.u32 (%p1457_p3), 24, %s1397_s15  ;;  %s1266_s24 = sshll.u32 (%p1457_p3), %s171_s22, 3 }
   0xe   : > { %s173_s28 = scalar_lea.vmem (%p1457_p3), [#allocation5], %s1266_s24 }
   0xf   : > { %s178_s27 = scalar_lea.vmem (%p1457_p3), %s1831_s0, %s1304_s23 }
  0x10   : > { %v195_v0 = vld [vmem:[%s178_s27] sm:$0x1] (%p1457_p3)  ;;  %v197_v1 = vld [vmem:[%s178_s27 + $0x3] sm:$0x1] (%p1457_p3)  ;;  %v199_v2 = vld [vmem:[%s178_s27 + $0x6] sm:$0x1] (%p1457_p3) }
  0x11   : > { %196 = vst [vmem:[%s173_s28] sm:$0x1] %v195_v0  ;;  %v201_v3 = vld [vmem:[%s178_s27 + $0x9] sm:$0x1]  ;;  %v203_v4 = vld [vmem:[%s178_s27 + $0xc] sm:$0x1] }
  0x12   : > { %198 = vst [vmem:[%s173_s28 + $0x1] sm:$0x1] %v197_v1  ;;  %v205_v5 = vld [vmem:[%s178_s27 + $0xf] sm:$0x1]  ;;  %v207_v6 = vld [vmem:[%s178_s27 + $0x12] sm:$0x1] }
  0x13   : > { %200 = vst [vmem:[%s173_s28 + $0x2] sm:$0x1] %v199_v2  ;;  %v209_v7 = vld [vmem:[%s178_s27 + $0x15] sm:$0x1] }
  0x14   : > { %202 = vst [vmem:[%s173_s28 + $0x3] sm:$0x1] %v201_v3 }
  0x15   : > { %204 = vst [vmem:[%s173_s28 + $0x4] sm:$0x1] %v203_v4 }
  0x16   : > { %206 = vst [vmem:[%s173_s28 + $0x5] sm:$0x1] %v205_v5 }
  0x17   : > { %208 = vst [vmem:[%s173_s28 + $0x6] sm:$0x1] %v207_v6 }
  0x18   : > { %210 = vst [vmem:[%s173_s28 + $0x7] sm:$0x1] %v209_v7 }
  0x19 PF: > { %250 = sbr.rel (!%p1457_p3) target bundleno = 38 (0x26), region = 61  ;;  %s252_s29 = sand.u32 (%p1457_p3), 1, %s1389_s13  }
  0x1a   : > { %s1171_s30 = smul.u32 (%p1457_p3), 24, %s1397_s15  ;;  %s1267_s4 = sshll.u32 (%p1457_p3), %s252_s29, 3 }
  0x1b   : > { %s254_s8 = scalar_lea.vmem (%p1457_p3), [#allocation6], %s1267_s4 }
  0x1c   : > { %s1173_s7 = scalar_lea.vmem (%p1457_p3), %s1832_s1, %s1171_s30 }
  0x1d   : > { %v1268_v8 = vld [vmem:[%s1173_s7 + $0x1] sm:$0x1] (%p1457_p3)  ;;  %v1269_v9 = vld [vmem:[%s1173_s7 + $0x4] sm:$0x1] (%p1457_p3)  ;;  %v1270_v10 = vld [vmem:[%s1173_s7 + $0x7] sm:$0x1] (%p1457_p3) }
  0x1e   : > { %280 = vst [vmem:[%s254_s8] sm:$0x1] %v1268_v8  ;;  %v1271_v11 = vld [vmem:[%s1173_s7 + $0xa] sm:$0x1]  ;;  %v1272_v12 = vld [vmem:[%s1173_s7 + $0xd] sm:$0x1] }
  0x1f   : > { %282 = vst [vmem:[%s254_s8 + $0x1] sm:$0x1] %v1269_v9  ;;  %v1273_v13 = vld [vmem:[%s1173_s7 + $0x10] sm:$0x1]  ;;  %v1274_v14 = vld [vmem:[%s1173_s7 + $0x13] sm:$0x1] }
  0x20   : > { %284 = vst [vmem:[%s254_s8 + $0x2] sm:$0x1] %v1270_v10  ;;  %v1275_v15 = vld [vmem:[%s1173_s7 + $0x16] sm:$0x1] }
  0x21   : > { %286 = vst [vmem:[%s254_s8 + $0x3] sm:$0x1] %v1271_v11 }
  0x22   : > { %288 = vst [vmem:[%s254_s8 + $0x4] sm:$0x1] %v1272_v12 }
  0x23   : > { %290 = vst [vmem:[%s254_s8 + $0x5] sm:$0x1] %v1273_v13 }
  0x24   : > { %292 = vst [vmem:[%s254_s8 + $0x6] sm:$0x1] %v1274_v14 }
  0x25   : > { %294 = vst [vmem:[%s254_s8 + $0x7] sm:$0x1] %v1275_v15 }
  0x26 PF: > { %334 = sbr.rel (!%p1457_p3) target bundleno = 51 (0x33), region = 102  ;;  %s336_s9 = sand.u32 (%p1457_p3), 1, %s1389_s13  }
  0x27   : > { %s1178_s10 = smul.u32 (%p1457_p3), 24, %s1397_s15  ;;  %s1276_s11 = sshll.u32 (%p1457_p3), %s336_s9, 3 }
  0x28   : > { %s338_s23 = scalar_lea.vmem (%p1457_p3), [#allocation7], %s1276_s11 }
  0x29   : > { %s1180_s22 = scalar_lea.vmem (%p1457_p3), %s1833_s2, %s1178_s10 }
  0x2a   : > { %v1277_v16 = vld [vmem:[%s1180_s22 + $0x2] sm:$0x1] (%p1457_p3)  ;;  %v1278_v17 = vld [vmem:[%s1180_s22 + $0x5] sm:$0x1] (%p1457_p3)  ;;  %v1279_v18 = vld [vmem:[%s1180_s22 + $0x8] sm:$0x1] (%p1457_p3) }
  0x2b   : > { %364 = vst [vmem:[%s338_s23] sm:$0x1] %v1277_v16  ;;  %v1280_v19 = vld [vmem:[%s1180_s22 + $0xb] sm:$0x1]  ;;  %v1281_v20 = vld [vmem:[%s1180_s22 + $0xe] sm:$0x1] }
  0x2c   : > { %366 = vst [vmem:[%s338_s23 + $0x1] sm:$0x1] %v1278_v17  ;;  %v1282_v21 = vld [vmem:[%s1180_s22 + $0x11] sm:$0x1]  ;;  %v1283_v22 = vld [vmem:[%s1180_s22 + $0x14] sm:$0x1] }
  0x2d   : > { %368 = vst [vmem:[%s338_s23 + $0x2] sm:$0x1] %v1279_v18  ;;  %v1284_v23 = vld [vmem:[%s1180_s22 + $0x17] sm:$0x1] }
  0x2e   : > { %370 = vst [vmem:[%s338_s23 + $0x3] sm:$0x1] %v1280_v19 }
  0x2f   : > { %372 = vst [vmem:[%s338_s23 + $0x4] sm:$0x1] %v1281_v20 }
  0x30   : > { %374 = vst [vmem:[%s338_s23 + $0x5] sm:$0x1] %v1282_v21 }
  0x31   : > { %376 = vst [vmem:[%s338_s23 + $0x6] sm:$0x1] %v1283_v22 }
  0x32   : > { %378 = vst [vmem:[%s338_s23 + $0x7] sm:$0x1] %v1284_v23 }
  0x33 PF: > { %p1285_p6 = scmp.ge.s32.totalorder %s1401_s16, 1  ;;  %p417_p7 = scmp.lt.s32.totalorder %s1401_s16, 3 }
  0x35   : > { %p418_p8 = pnand %p1285_p6, %p417_p7 }
  0x36   : > { %s424_s18 = sand.u32 (!%p418_p8), 1, %s1385_s12   ;;  %p480_p9 = scmp.lt.s32.totalorder (!%p418_p8), %s1393_s14, 1 }
  0x37   : > { %421 = sbr.rel (%p418_p8) target bundleno = 914 (0x392), region = 143  ;;  %s1492_s24 = sshll.u32 (!%p418_p8), %s424_s18, 3 }
  0x38   : > { %s1495_s25 = scalar_lea.vmem (!%p418_p8), [#allocation6], %s1492_s24  ;;  %s1517_s12 = scalar_lea.vmem (!%p418_p8), [#allocation5], %s1492_s24 }
  0x39   : > { %s1565_s26 = scalar_lea.vmem (!%p418_p8), [#allocation7], %s1492_s24 }
  0x3c   : > { %v1498_v24 = vld [vmem:[%s1495_s25] sm:$0x1]  ;;  %v1502_v25 = vld [vmem:[%s1495_s25 + $0x1] sm:$0x1]  ;;  %v1506_v27 = vld [vmem:[%s1495_s25 + $0x2] sm:$0x1] }
  0x3d   : > { %603 = vst [vmem:[#allocation1] ss:$9 sm:$0xff] %v1498_v24  ;;  %v1510_v29 = vld [vmem:[%s1495_s25 + $0x3] sm:$0x1]  ;;  %v1514_v31 = vld [vmem:[%s1495_s25 + $0x4] sm:$0x1] }
  0x3e   : > { %v506_v33 = vld [vmem:[%s1517_s12 + $0x1] sm:$0x1]  ;;  %v507_v34 = vld [vmem:[%s1517_s12 + $0x2] sm:$0x1]  ;;  %v505_v36 = vld [vmem:[%s1517_s12] sm:$0x1] }
  0x3f   : > { %v541_v35 = vunpack.c.l.bf16 %v506_v33  ;;  %v1524_v37 = vld [vmem:[%s1495_s25 + $0x5] sm:$0x1]  ;;  %v508_v38 = vld [vmem:[%s1517_s12 + $0x3] sm:$0x1]  ;;  %v542_v39 = vunpack.c.l.bf16 %v507_v34  ;;  %v540_v40 = vunpack.c.l.bf16 %v505_v36  ;;  %v509_v43 = vld [vmem:[%s1517_s12 + $0x4] sm:$0x1] }
  0x40   : > { %v543_v44 = vunpack.c.l.bf16 %v508_v38  ;;  %v510_v49 = vld [vmem:[%s1517_s12 + $0x5] sm:$0x1]  ;;  %v544_v50 = vunpack.c.l.bf16 %v509_v43  ;;  %v1531_v52 = vld [vmem:[%s1495_s25 + $0x6] sm:$0x1]  ;;  %v511_v57 = vld [vmem:[%s1517_s12 + $0x6] sm:$0x1] }
  0x41   : > { %v549_v41 = vmul.f32 0.25, %v541_v35  ;;  %v550_v45 = vmul.f32 0.25, %v542_v39  ;;  %v548_v47 = vmul.f32 0.25, %v540_v40  ;;  %v545_v58 = vunpack.c.l.bf16 %v510_v49  ;;  %v512_v2 = vld [vmem:[%s1517_s12 + $0x7] sm:$0x1]  ;;  %s1847_s14 = smov (!%p480_p9, %s1393_s14), 1 }
  0x42   : > { %v551_v51 = vmul.f32 0.25, %v543_v44  ;;  %vm581_vm0 = vcmask 1041409   ;;  %v552_v62 = vmul.f32 0.25, %v544_v50  ;;  %vm584_vm1 = vcmask 1042434   ;;  %v1547_v14 = vld [vmem:[%s1495_s25 + $0x7] sm:$0x1] }
  0x43   : > { %v557_v48 = vpack.c.bf16 %v549_v41, %v549_v41  ;;  %v558_v55 = vpack.c.bf16 %v550_v45, %v550_v45  ;;  %v556_v59 = vpack.c.bf16 %v548_v47, %v548_v47  ;;  %v546_v3 = vunpack.c.l.bf16 %v511_v57  ;;  %s1289_s27 = sshll.u32 %s1847_s14, 3 }
  0x44   : > { %v604_v26 = vld [vmem:[#allocation1] sm:$0xf]  ;;  %v559_v0 = vpack.c.bf16 %v551_v51, %v551_v51  ;;  %v553_v6 = vmul.f32 0.25, %v545_v58  ;;  %v560_v10 = vpack.c.bf16 %v552_v62, %v552_v62  ;;  %v547_v12 = vunpack.c.l.bf16 %v512_v2  ;;  %s1731_s30 = scalar_lea.vmem %s1834_s3, %s1289_s27 }
  0x45   : > { %607 = vst [vmem:[#allocation1] ss:$9 sm:$0xff] %v1502_v25  ;;  %v634_v53 = vunpack.c.l.b16 %v604_v26  ;;  %v1534_v60 = vunpack.c.l.b16 %v557_v48  ;;  %v1538_v4 = vunpack.c.l.b16 %v558_v55  ;;  %v1541_v7 = vunpack.c.l.b16 %v556_v59  ;;  %v1584_v58 = vld [vmem:[%s1565_s26 + $0x1] sm:$0x1]  ;;  %v1593_v2 = vld [vmem:[%s1565_s26 + $0x2] sm:$0x1] }
  0x46   : > { %v1544_v13 = vunpack.c.l.b16 %v559_v0  ;;  %vm587_vm2 = vcmask 1043459   ;;  %v554_v16 = vmul.f32 0.25, %v546_v3  ;;  %v561_v19 = vpack.c.bf16 %v553_v6, %v553_v6 }
  0x47   : > { %v580_v8 = vrot.slane %v1534_v60, 7  ;;  %v583_v17 = vrot.slane %v1538_v4, 6  ;;  %v1553_v23 = vunpack.c.l.b16 %v560_v10  ;;  %vm590_vm3 = vcmask 1044484   ;;  %v1612_v10 = vld [vmem:[%s1565_s26 + $0x5] sm:$0x1] }
  0x48   : > { %v562_v33 = vpack.c.bf16 %v554_v16, %v554_v16  ;;  %v1559_v36 = vunpack.c.l.b16 %v561_v19  ;;  %vm593_vm4 = vcmask 1045509   ;;  %vm596_vm5 = vcmask 1046534   ;;  %v1624_v16 = vld [vmem:[%s1565_s26 + $0x7] sm:$0x1] }
  0x49   : > { %v582_v20 = vsel %vm581_vm0, %v580_v8, %v1541_v7  ;;  %v589_v39 = vrot.slane %v1553_v23, 4  ;;  %vm599_vm6 = vcmask 1047559   ;;  %vm498_vm7 = vcmask 130048   ;;  %v1606_v8 = vld [vmem:[%s1565_s26 + $0x4] sm:$0x1] }
  0x4a   : > { %v585_v34 = vsel %vm584_vm1, %v583_v17, %v582_v20  ;;  %v1570_v44 = vunpack.c.l.b16 %v562_v33  ;;  %vm493_vm8 = vcmask 7168   ;;  %vm679_vm10 = vcmask 64512  }
  0x4b   : > { %vm769_vm11 = vcmask 1043456   ;;  %vm989_vm12 = vcmask 1040384   ;;  %vm1030_vm13 = vcmask 122880   ;;  %vm1031_vm14 = vsmask.f32 256 }
  0x4c   : > { %v608_v28 = vld [vmem:[#allocation1] sm:$0xf]  ;;  %vm1738_vm15 = vmand %vm1030_vm13, %vm1031_vm14 }
  0x4d   : > { %611 = vst [vmem:[#allocation1] ss:$9 sm:$0xff] %v1506_v27  ;;  %v635_v46 = vunpack.c.l.b16 %v608_v28  ;;  %v555_v28 = vmul.f32 0.25, %v547_v12  ;;  %v1618_v12 = vld [vmem:[%s1565_s26 + $0x6] sm:$0x1] }
  0x4f   : > { %v642_v56 = vrot.slane %v635_v46, 7  ;;  %v563_v40 = vpack.c.bf16 %v555_v28, %v555_v28  ;;  %v592_v46 = vrot.slane %v1559_v36, 3 }
  0x51   : > { %v643_v5 = vsel %vm581_vm0, %v642_v56, %v634_v53  ;;  %v1576_v50 = vunpack.c.l.b16 %v563_v40  ;;  %v595_v53 = vrot.slane %v1570_v44, 2 }
  0x53   : > { %v598_v57 = vrot.slane %v1576_v50, 1 }
  0x54   : > { %v612_v30 = vld [vmem:[#allocation1] sm:$0xf] }
  0x55   : > { %615 = vst [vmem:[#allocation1] ss:$9 sm:$0xff] %v1510_v29  ;;  %v636_v54 = vunpack.c.l.b16 %v612_v30  ;;  %v586_v30 = vrot.slane %v1544_v13, 5 }
  0x57   : > { %v644_v1 = vrot.slane %v636_v54, 6  ;;  %v588_v41 = vsel %vm587_vm2, %v586_v30, %v585_v34 }
  0x58   : > { %v591_v48 = vsel %vm590_vm3, %v589_v39, %v588_v41  ;;  %v791_v39 = vrot.slane %v1538_v4, 7  ;;  %v795_v4 = vrot.slane %v1553_v23, 5 }
  0x59   : > { %v645_v15 = vsel %vm584_vm1, %v644_v1, %v643_v5  ;;  %v594_v55 = vsel %vm593_vm4, %v592_v46, %v591_v48  ;;  %v1600_v5 = vld [vmem:[%s1565_s26 + $0x3] sm:$0x1] }
  0x5c   : > { %v616_v32 = vld [vmem:[#allocation1] sm:$0xf] }
  0x5d   : > { %619 = vst [vmem:[#allocation1] ss:$9 sm:$0xff] %v1514_v31  ;;  %v637_v63 = vunpack.c.l.b16 %v616_v32 }
  0x5f   : > { %v646_v11 = vrot.slane %v637_v63, 5 }
  0x61   : > { %v647_v26 = vsel %vm587_vm2, %v646_v11, %v645_v15 }
  0x64   : > { %v620_v42 = vld [vmem:[#allocation1] sm:$0xf] }
  0x65   : > { %623 = vst [vmem:[#allocation1] ss:$9 sm:$0xff] %v1524_v37  ;;  %v638_v9 = vunpack.c.l.b16 %v620_v42  ;;  %v1568_v42 = vld [vmem:[%s1565_s26] sm:$0x1] }
  0x67   : > { %v648_v22 = vrot.slane %v638_v9, 4 }
  0x69   : > { %v649_v38 = vsel %vm590_vm3, %v648_v22, %v647_v26 }
  0x6c   : > { %v624_v61 = vld [vmem:[#allocation1] sm:$0xf] }
  0x6d   : > { %627 = vst [vmem:[#allocation1] ss:$9 sm:$0xff] %v1531_v52  ;;  %v639_v18 = vunpack.c.l.b16 %v624_v61  ;;  %v597_v61 = vsel %vm596_vm5, %v595_v53, %v594_v55 }
  0x6e   : > { %v600_v0 = vsel %vm599_vm6, %v598_v57, %v597_v61  ;;  %v799_v57 = vrot.slane %v1570_v44, 3  ;;  %v530_v61 = vlaneseq }
  0x6f   : > { %v650_v35 = vrot.slane %v639_v18, 3  ;;  %v601_v1 = vpack.c.b16 %v600_v0, %v600_v0  ;;  %v801_v0 = vrot.slane %v1576_v50, 2 }
  0x71   : > { %v651_v45 = vsel %vm593_vm4, %v650_v35, %v649_v38 }
  0x74   : > { %v628_v21 = vld [vmem:[#allocation1] sm:$0xf] }
  0x75   : > { %631 = vst [vmem:[#allocation1] ss:$9 sm:$0xff] %v1547_v14  ;;  %v640_v32 = vunpack.c.l.b16 %v628_v21 }
  0x77   : > { %v652_v43 = vrot.slane %v640_v32, 2 }
  0x79   : > { %v653_v51 = vsel %vm596_vm5, %v652_v43, %v651_v45 }
  0x7c   : > { %v632_v47 = vld [vmem:[#allocation1] sm:$0xf] }
  0x7d   : > { %v641_v49 = vunpack.c.l.b16 %v632_v47  ;;  %712 = vst [vmem:[#allocation1] ss:$9 sm:$0xff] %v1568_v42 }
  0x7f   : > { %v654_v54 = vrot.slane %v641_v49, 1 }
  0x81   : > { %v655_v56 = vsel %vm599_vm6, %v654_v54, %v653_v51  ;;  %v797_v54 = vrot.slane %v1559_v36, 4 }
  0x82   : > { %v656_v59 = vpack.c.b16 %v655_v56, %v655_v56 }
  0x84   : > { %v662_v62 = vsel %vm498_vm7, %v656_v59, 0  ;;  %v1588_v63 = vld [vmem:[#allocation1] sm:$0xf] }
  0x85   : > { %671 = vmatpush.bf16.xpose.msra.mxu0 %v662_v62  ;;  %716 = vst [vmem:[#allocation1] ss:$9 sm:$0xff] %v1584_v58 }
  0x8c   : > { %1290 = vmatmul.msk.bf16.vlgmr.msra.gmra.mxu0 %vm498_vm7, %v601_v1  ;;  %v1596_v3 = vld [vmem:[#allocation1] sm:$0xf] }
  0x8d   : > { %720 = vst [vmem:[#allocation1] ss:$9 sm:$0xff] %v1593_v2 }
  0x94   : > { %v1602_v6 = vld [vmem:[#allocation1] sm:$0xf] }
  0x95   : > { %724 = vst [vmem:[#allocation1] ss:$9 sm:$0xff] %v1600_v5 }
  0x9c   : > { %v1608_v9 = vld [vmem:[#allocation1] sm:$0xf] }
  0x9d   : > { %728 = vst [vmem:[#allocation1] ss:$9 sm:$0xff] %v1606_v8 }
  0xa4   : > { %v1614_v11 = vld [vmem:[#allocation1] sm:$0xf] }
  0xa5   : > { %732 = vst [vmem:[#allocation1] ss:$9 sm:$0xff] %v1612_v10 }
  0xac   : > { %v1620_v15 = vld [vmem:[#allocation1] sm:$0xf] }
  0xad   : > { %736 = vst [vmem:[#allocation1] ss:$9 sm:$0xff] %v1618_v12 }
  0xb4   : > { %v1626_v17 = vld [vmem:[#allocation1] sm:$0xf] }
  0xb5   : > { %740 = vst [vmem:[#allocation1] ss:$9 sm:$0xff] %v1624_v16 }
  0xbc   : > { %v1629_v18 = vld [vmem:[#allocation1] sm:$0xf] }
  0xbd   : > { %804 = vst [vmem:[#allocation1] ss:$9 sm:$0xff] %v1498_v24 }
  0xc4   : > { %v805_v19 = vld [vmem:[#allocation1] sm:$0xf] }
  0xc5   : > { %807 = vst [vmem:[#allocation1] ss:$9 sm:$0xff] %v1502_v25  ;;  %v828_v28 = vunpack.c.l.b16 %v805_v19  ;;  %v531_v19 = vshrl.u32 %v530_v61, 7 }
  0xc7   : > { %v836_v33 = vrot.slane %v828_v28, 1 }
  0xcc   : > { %v808_v20 = vld [vmem:[#allocation1] sm:$0xf] }
  0xcd   : > { %810 = vst [vmem:[#allocation1] ss:$9 sm:$0xff] %v1506_v27  ;;  %v829_v32 = vunpack.c.l.b16 %v808_v20  ;;  %v1403_v27 = vmov -inf   ;;  %v536_v20 = vand.u32 127, %v530_v61 }
  0xce   : > { %494 = vst.msk [vmem:[#allocation2] sm:$0xff] %vm493_vm8, %v1403_v27 }
  0xcf   : > { %495 = vst.msk [vmem:[#allocation2 + $0x8] sm:$0xff] %vm493_vm8, %v1403_v27  ;;  %vm539_vm9 = vcmp.le.s32.totalorder %v536_v20, %v531_v19 }
  0xd4   : > { %v811_v21 = vld [vmem:[#allocation1] sm:$0xf] }
  0xd5   : > { %813 = vst [vmem:[#allocation1] ss:$9 sm:$0xff] %v1510_v29  ;;  %v830_v30 = vunpack.c.l.b16 %v811_v21  ;;  %v837_v29 = vsel %vm581_vm0, %v829_v32, %v836_v33  ;;  %v678_v32 = vld [vmem:[#allocation2] sm:$0xff] }
  0xd6   : > { %v872_v61 = vld [vmem:[#allocation2 + $0x8] sm:$0xff] }
  0xd7   : > { %v838_v34 = vrot.slane %v830_v30, 7  ;;  %v1404_v30 = vmov 0  }
  0xd8   : > { %1348 = vset.pattern.permute.xlu1 %v1404_v30  ;;  %1349 = vset.pattern.permute.xlu0 %v1404_v30 }
  0xd9   : > { %v839_v38 = vsel %vm584_vm1, %v838_v34, %v837_v29  ;;  %1350 = vset.pattern.permute.xlu2 %v1404_v30 }
  0xdc   : > { %v814_v22 = vld [vmem:[#allocation1] sm:$0xf] }
  0xdd   : > { %816 = vst [vmem:[#allocation1] ss:$9 sm:$0xff] %v1514_v31  ;;  %v831_v25 = vunpack.c.l.b16 %v814_v22  ;;  %v789_v31 = vrot.slane %v1541_v7, 1  ;;  %v793_v7 = vrot.slane %v1544_v13, 6 }
  0xdf   : > { %v840_v35 = vrot.slane %v831_v25, 6 }
  0xe1   : > { %v841_v45 = vsel %vm587_vm2, %v840_v35, %v839_v38  ;;  %v744_v38 = vunpack.c.l.b16 %v1596_v3 }
  0xe4   : > { %v817_v26 = vld [vmem:[#allocation1] sm:$0xf] }
  0xe5   : > { %819 = vst [vmem:[#allocation1] ss:$9 sm:$0xff] %v1524_v37  ;;  %v832_v37 = vunpack.c.l.b16 %v817_v26 }
  0xe7   : > { %v842_v43 = vrot.slane %v832_v37, 5 }
  0xe9   : > { %v843_v49 = vsel %vm590_vm3, %v842_v43, %v841_v45  ;;  %v747_v43 = vunpack.c.l.b16 %v1614_v11 }
  0xeb   : > { %v757_v3 = vrot.slane %v747_v43, 4 }
  0xec   : > { %v820_v24 = vld [vmem:[#allocation1] sm:$0xf] }
  0xed   : > { %822 = vst [vmem:[#allocation1] ss:$9 sm:$0xff] %v1531_v52  ;;  %v833_v40 = vunpack.c.l.b16 %v820_v24  ;;  %v790_v52 = vsel %vm581_vm0, %v1534_v60, %v789_v31 }
  0xee   : > { %v792_v47 = vsel %vm584_vm1, %v791_v39, %v790_v52  ;;  %v745_v39 = vunpack.c.l.b16 %v1602_v6  ;;  %v746_v52 = vunpack.c.l.b16 %v1608_v9  ;;  %v750_v6 = vunpack.c.l.b16 %v1629_v18 }
  0xef   : > { %v844_v48 = vrot.slane %v833_v40, 4  ;;  %v794_v51 = vsel %vm587_vm2, %v793_v7, %v792_v47  ;;  %v743_v40 = vunpack.c.l.b16 %v1588_v63  ;;  %v748_v7 = vunpack.c.l.b16 %v1620_v15 }
  0xf0   : > { %v796_v55 = vsel %vm590_vm3, %v795_v4, %v794_v51  ;;  %v753_v45 = vrot.slane %v745_v39, 6  ;;  %v755_v47 = vrot.slane %v746_v52, 5 }
  0xf1   : > { %v845_v60 = vsel %vm593_vm4, %v844_v48, %v843_v49  ;;  %v798_v23 = vsel %vm593_vm4, %v797_v54, %v796_v55  ;;  %v749_v48 = vunpack.c.l.b16 %v1626_v17  ;;  %v759_v4 = vrot.slane %v748_v7, 3 }
  0xf2   : > { %v800_v36 = vsel %vm596_vm5, %v799_v57, %v798_v23 }
  0xf3   : > { %v761_v51 = vrot.slane %v749_v48, 2 }
  0xf4   : > { %v823_v41 = vld [vmem:[#allocation1] sm:$0xf] }
  0xf5   : > { %825 = vst [vmem:[#allocation1] ss:$9 sm:$0xff] %v1547_v14  ;;  %v834_v46 = vunpack.c.l.b16 %v823_v41  ;;  %v751_v41 = vrot.slane %v744_v38, 7 }
  0xf7   : > { %v846_v53 = vrot.slane %v834_v46, 3  ;;  %v752_v46 = vsel %vm581_vm0, %v751_v41, %v743_v40 }
  0xf8   : > { %v754_v49 = vsel %vm584_vm1, %v753_v45, %v752_v46 }
  0xf9   : > { %v847_v13 = vsel %vm596_vm5, %v846_v53, %v845_v60  ;;  %v756_v63 = vsel %vm587_vm2, %v755_v47, %v754_v49  ;;  %v763_v53 = vrot.slane %v750_v6, 1 }
  0xfa   : > { %v758_v9 = vsel %vm590_vm3, %v757_v3, %v756_v63 }
  0xfb   : > { %v760_v11 = vsel %vm593_vm4, %v759_v4, %v758_v9 }
  0xfc   : > { %v826_v14 = vld [vmem:[#allocation1] sm:$0xf]  ;;  %v762_v15 = vsel %vm596_vm5, %v761_v51, %v760_v11 }
  0xfd   : > { %v835_v56 = vunpack.c.l.b16 %v826_v14  ;;  %905 = vst [vmem:[#allocation1] ss:$9 sm:$0xff] %v1568_v42  ;;  %v802_v42 = vsel %vm599_vm6, %v801_v0, %v800_v36  ;;  %v764_v60 = vsel %vm599_vm6, %v763_v53, %v762_v15  ;;  %v1405_v14 = vmov 0.0  }
  0xfe   : > { %v803_v44 = vpack.c.b16 %v802_v42, %v802_v42  ;;  %v765_v17 = vpack.c.b16 %v764_v60, %v764_v60  ;;  %496 = vst.msk [vmem:[#allocation3] sm:$0xff] %vm493_vm8, %v1405_v14 }
  0xff   : > { %v848_v59 = vrot.slane %v835_v56, 2  ;;  %499 = vst.msk [vmem:[#allocation4] sm:$0xff] %vm498_vm7, %v1405_v14 }
 0x100   : > { %v771_v54 = vsel %vm769_vm11, %v765_v17, 0  ;;  %500 = vst.msk [vmem:[#allocation4 + $0x8] sm:$0xff] %vm498_vm7, %v1405_v14 }
 0x101   : > { %v849_v62 = vsel %vm599_vm6, %v848_v59, %v847_v13  ;;  %780 = vmatpush.bf16.msra.mxu1 %v771_v54  ;;  %497 = vst.msk [vmem:[#allocation3 + $0x8] sm:$0xff] %vm493_vm8, %v1405_v14 }
 0x102   : > { %v850_v1 = vpack.c.b16 %v849_v62, %v849_v62 }
 0x104   : > { %v855_v21 = vsel %vm498_vm7, %v850_v1, 0  ;;  %v906_v19 = vld [vmem:[#allocation1] sm:$0xf] }
 0x105   : > { %864 = vmatpush.bf16.xpose.msra.mxu2 %v855_v21  ;;  %908 = vst [vmem:[#allocation1] ss:$9 sm:$0xff] %v1584_v58  ;;  %v695_v7 = vld [vmem:[#allocation3] sm:$0xff] }
 0x106   : > { %v703_v49 = vld [vmem:[#allocation4] sm:$0xff] }
 0x108   : > { %v889_v54 = vld [vmem:[#allocation3 + $0x8] sm:$0xff] }
 0x109   : > { %v673_v22 = vpop.f32.mrf.mxu0 }
 0x10a   : > { %v677_v26 = vsel %vm539_vm9, %v673_v22, -1e+30 }
 0x10b   : > { %v680_v28 = vsel %vm679_vm10, %v677_v26, -inf }
 0x10c   : > { %1292 = vmatmul.msk.bf16.vlgmr.msra.gmra.mxu2 %vm498_vm7, %v803_v44  ;;  %681 = vmax.xlane.f32.xlu0 %v680_v28  ;;  %v909_v20 = vld [vmem:[#allocation1] sm:$0xf]  ;;  %v929_v28 = vunpack.c.l.b16 %v906_v19 }
 0x10d   : > { %911 = vst [vmem:[#allocation1] ss:$9 sm:$0xff] %v1593_v2 }
 0x10e   : > { %v937_v2 = vrot.slane %v929_v28, 1  ;;  %v1036_v28 = vld [vmem:[%s1731_s30 + $0x1] sm:$0x1] }
 0x111   : > { %v675_v50 = vpop.f32.mrf.mxu0 }
 0x112   : > { %v930_v50 = vunpack.c.l.b16 %v909_v20  ;;  %v1033_v20 = vld [vmem:[%s1731_s30] sm:$0x1] }
 0x114   : > { %v912_v21 = vld [vmem:[#allocation1] sm:$0xf] }
 0x115   : > { %914 = vst [vmem:[#allocation1] ss:$9 sm:$0xff] %v1600_v5  ;;  %v931_v58 = vunpack.c.l.b16 %v912_v21 }
 0x11c   : > { %v915_v42 = vld [vmem:[#allocation1] sm:$0xf] }
 0x11d   : > { %917 = vst [vmem:[#allocation1] ss:$9 sm:$0xff] %v1606_v8  ;;  %v932_v30 = vunpack.c.l.b16 %v915_v42 }
 0x11f   : > { %v941_v8 = vrot.slane %v932_v30, 6  ;;  %v1039_v30 = vld [vmem:[%s1731_s30 + $0x2] sm:$0x1] }
 0x124   : > { %v918_v44 = vld [vmem:[#allocation1] sm:$0xf] }
 0x125   : > { %920 = vst [vmem:[#allocation1] ss:$9 sm:$0xff] %v1612_v10 }
 0x12c   : > { %v921_v22 = vld [vmem:[#allocation1] sm:$0xf] }
 0x12d   : > { %923 = vst [vmem:[#allocation1] ss:$9 sm:$0xff] %v1618_v12  ;;  %v934_v5 = vunpack.c.l.b16 %v921_v22 }
 0x17f   : > { %v682_v33 = vpop.xlane.xlu0 %681 }
 0x180   : > { %v683_v24 = vmax.f32 %v678_v32, %v682_v33  ;;  %v939_v33 = vrot.slane %v931_v58, 7 }
 0x182   : > { %788 = vst.msk [vmem:[#allocation2] sm:$0xff] %vm493_vm8, %v683_v24  ;;  %689 = vperm.xlu1 %1348, %v683_v24   ;;  %v684_v29 = vsub.f32 %v678_v32, %v683_v24  ;;  %v933_v32 = vunpack.c.l.b16 %v918_v44  ;;  %v938_v24 = vsel %vm581_vm0, %v930_v50, %v937_v2  ;;  %v1045_v2 = vld [vmem:[%s1731_s30 + $0x4] sm:$0x1] }
 0x183   : > { %v940_v10 = vsel %vm584_vm1, %v939_v33, %v938_v24 }
 0x184   : > { %v685_v37 = vmul.f32 1.442695, %v684_v29  ;;  %v943_v29 = vrot.slane %v933_v32, 5 }
 0x186   : > { %1351 = vpow2.f32 %v685_v37 }
 0x18c   : > { %v1674_v35 = vpop.eup %1351 }
 0x18d   : > { %v696_v46 = vmul.f32 %v1674_v35, %v695_v7 }
 0x18f   : > { %v866_v25 = vpop.f32.mrf.mxu2 }
 0x190   : > { %v1670_v34 = vsel %vm539_vm9, %v866_v25, -1e+30 }
 0x191   : > { %v873_v27 = vsel %vm679_vm10, %v1670_v34, -inf }
 0x192   : > { %874 = vmax.xlane.f32.xlu0 %v873_v27 }
 0x197   : > { %v868_v31 = vpop.f32.mrf.mxu2 }
 0x198   : > { %v942_v31 = vsel %vm587_vm2, %v941_v8, %v940_v10  ;;  %v897_v8 = vld [vmem:[#allocation4 + $0x8] sm:$0xff]  ;;  %v1048_v10 = vld [vmem:[%s1731_s30 + $0x5] sm:$0x1] }
 0x199   : > { %v944_v37 = vsel %vm590_vm3, %v943_v29, %v942_v31  ;;  %vm1108_vm3 = vsmask.f32 7938 }
 0x1a6   : > { %706 = vperm.xlu0 %1349, %v1674_v35  }
 0x1f4   : > { %v690_v18 = vpop.permute.xlu1 %689 }
 0x1f5   : > { %v692_v55 = vsub.f32 %v677_v26, %v690_v18  ;;  %v924_v26 = vld [vmem:[#allocation1] sm:$0xf] }
 0x1f6   : > { %926 = vst [vmem:[#allocation1] ss:$9 sm:$0xff] %v1624_v16  ;;  %v935_v27 = vunpack.c.l.b16 %v924_v26  ;;  %v945_v16 = vrot.slane %v934_v5, 4 }
 0x1f7   : > { %v693_v56 = vmul.f32 1.442695, %v692_v55 }
 0x1f8   : > { %v947_v38 = vrot.slane %v935_v27, 3  ;;  %v946_v39 = vsel %vm593_vm4, %v945_v16, %v944_v37  ;;  %v1042_v27 = vld [vmem:[%s1731_s30 + $0x3] sm:$0x1]  ;;  %v1051_v37 = vld [vmem:[%s1731_s30 + $0x6] sm:$0x1]  ;;  %vm1780_vm4 = vmand %vm1030_vm13, %vm1108_vm3 }
 0x1f9   : > { %1353 = vpow2.f32 %v693_v56 }
 0x1fa   : > { %v948_v52 = vsel %vm596_vm5, %v947_v38, %v946_v39 }
 0x1fd   : > { %v927_v25 = vld [vmem:[#allocation1] sm:$0xf] }
 0x1fe   : > { %v936_v12 = vunpack.c.l.b16 %v927_v25 }
 0x1ff   : > { %v1354_v13 = vpop.eup %1353 }
 0x200   : > { %v697_v57 = vsel %vm679_vm10, %v1354_v13, 0.0  ;;  %v710_v59 = vpack.c.bf16 %v1354_v13, %v1354_v13  ;;  %v949_v40 = vrot.slane %v936_v12, 2 }
 0x201   : > { %698 = vadd.xlane.f32.xlu2 %v697_v57 }
 0x202   : > { %1291 = vmatmul.msk.bf16.vlgmr.msra.gmra.mxu1 %vm679_vm10, %v710_v59  ;;  %v950_v41 = vsel %vm599_vm6, %v949_v40, %v948_v52 }
 0x203   : > { %v951_v43 = vpack.c.b16 %v950_v41, %v950_v41  ;;  %v1054_v41 = vld [vmem:[%s1731_s30 + $0x7] sm:$0x1] }
 0x205   : > { %v875_v23 = vpop.xlane.xlu0 %874  ;;  %v956_v45 = vsel %vm769_vm11, %v951_v43, 0 }
 0x206   : > { %v876_v62 = vmax.f32 %v872_v61, %v875_v23  ;;  %965 = vmatpush.bf16.msra.mxu3 %v956_v45 }
 0x208   : > { %v877_v0 = vsub.f32 %v872_v61, %v876_v62  ;;  %973 = vst.msk [vmem:[#allocation2 + $0x8] sm:$0xff] %vm493_vm8, %v876_v62  ;;  %882 = vperm.xlu1 %1348, %v876_v62  }
 0x20a   : > { %v878_v1 = vmul.f32 1.442695, %v877_v0 }
 0x20c   : > { %1355 = vpow2.f32 %v878_v1 }
 0x212   : > { %v1700_v36 = vpop.eup %1355 }
 0x213   : > { %900 = vperm.xlu1 %1348, %v1700_v36   ;;  %v890_v14 = vmul.f32 %v1700_v36, %v889_v54 }
 0x218   : > { %v707_v3 = vpop.permute.xlu0 %706 }
 0x219   : > { %v709_v4 = vmul.f32 %v707_v3, %v703_v49 }
 0x274   : > { %v699_v47 = vpop.xlane.xlu2 %698 }
 0x275   : > { %v700_v48 = vadd.f32 %v699_v47, %v696_v46 }
 0x277   : > { %702 = vst.msk [vmem:[#allocation3] sm:$0xff] %vm493_vm8, %v700_v48 }
 0x27a   : > { %v883_v6 = vpop.permute.xlu1 %882 }
 0x27b   : > { %v885_v63 = vsub.f32 %v1670_v34, %v883_v6 }
 0x27d   : > { %v886_v9 = vmul.f32 1.442695, %v885_v63 }
 0x27e   : > { %v978_v17 = vld [vmem:[#allocation3] sm:$0xff] }
 0x27f   : > { %1357 = vpow2.f32 %v886_v9  ;;  %v782_v51 = vpop.f32.mrf.mxu1 }
 0x280   : > { %v786_v11 = vadd.f32 %v782_v51, %v709_v4  ;;  %1359 = vrcp.f32 %v978_v17 }
 0x282   : > { %787 = vst.msk [vmem:[#allocation4] sm:$0xff] %vm498_vm7, %v786_v11 }
 0x285   : > { %v1358_v53 = vpop.eup %1357  ;;  %v901_v25 = vpop.permute.xlu1 %900 }
 0x286   : > { %v891_v35 = vsel %vm679_vm10, %v1358_v53, 0.0  ;;  %v904_v15 = vpack.c.bf16 %v1358_v53, %v1358_v53  ;;  %v1360_v34 = vpop.eup %1359  ;;  %v903_v7 = vmul.f32 %v901_v25, %v897_v8 }
 0x287   : > { %v784_v60 = vpop.f32.mrf.mxu1  ;;  %892 = vadd.xlane.f32.xlu2 %v891_v35 }
 0x288   : > { %1293 = vmatmul.msk.bf16.vlgmr.msra.gmra.mxu3 %vm679_vm10, %v904_v15 }
 0x289   : > { %v977_v13 = vld [vmem:[#allocation4] sm:$0xff] }
 0x29f   : > { %982 = vperm.xlu2 %1350, %v1360_v34  }
 0x2fa   : > { %v893_v18 = vpop.xlane.xlu2 %892 }
 0x2fb   : > { %v894_v55 = vadd.f32 %v893_v18, %v890_v14 }
 0x2fd   : > { %895 = vst.msk [vmem:[#allocation3 + $0x8] sm:$0xff] %vm493_vm8, %v894_v55 }
 0x302   : > { %v983_v56 = vpop.permute.xlu2 %982 }
 0x303   : > { %v985_v57 = vmul.f32 %v983_v56, %v977_v13 }
 0x304   : > { %v1060_v59 = vld [vmem:[#allocation3 + $0x8] sm:$0xff] }
 0x305   : > { %v986_v61 = vpack.c.bf16 %v985_v57, %v985_v57  ;;  %1361 = vrcp.f32 %v1060_v59 }
 0x307   : > { %v988_v23 = vrot.slane %v986_v61, 3 }
 0x309   : > { %v992_v62 = vsel %vm989_vm12, %v986_v61, %v988_v23  ;;  %v995_v0 = vsel %vm581_vm0, %v986_v61, %v988_v23  ;;  %v999_v1 = vsel %vm584_vm1, %v986_v61, %v988_v23  ;;  %v1003_v36 = vsel %vm587_vm2, %v986_v61, %v988_v23 }
 0x30a   : > { %v997_v21 = vrot.slane %v995_v0, 1  ;;  %v1001_v42 = vrot.slane %v999_v1, 2  ;;  %v1005_v44 = vrot.slane %v1003_v36, 3  ;;  %v1007_v22 = vunpack.i.h.s16 %v992_v62 }
 0x30b   : > { %v1362_v26 = vpop.eup %1361  ;;  %v1294_v58 = vpack.i.b16 %v992_v62, %v992_v62  ;;  %v967_v50 = vpop.f32.mrf.mxu3 }
 0x30c   : > { %v1009_v32 = vunpack.i.h.s16 %v997_v21  ;;  %v1011_v33 = vunpack.i.h.s16 %v1001_v42  ;;  %v1013_v5 = vunpack.i.h.s16 %v1005_v44  ;;  %v1015_v24 = vpack.i.b16 %v1007_v22, %v1007_v22  ;;  %1064 = vperm.xlu1 %1348, %v1362_v26  }
 0x30d   : > { %v1295_v29 = vpack.i.b16 %v997_v21, %v997_v21  ;;  %v1296_v12 = vpack.i.b16 %v1001_v42, %v1001_v42  ;;  %v1297_v31 = vpack.i.b16 %v1005_v44, %v1005_v44  ;;  %v1034_v16 = vsel %vm1738_vm15, %v1294_v58, %v1033_v20 }
 0x30e   : > { %v1017_v38 = vpack.i.b16 %v1009_v32, %v1009_v32  ;;  %v1019_v39 = vpack.i.b16 %v1011_v33, %v1011_v33  ;;  %v1021_v40 = vpack.i.b16 %v1013_v5, %v1013_v5  ;;  %1035 = vst [vmem:[%s1731_s30] sm:$0x1] %v1034_v16  ;;  %v1037_v52 = vsel %vm1738_vm15, %v1015_v24, %v1036_v28 }
 0x30f   : > { %1038 = vst [vmem:[%s1731_s30 + $0x1] sm:$0x1] %v1037_v52  ;;  %v1040_v43 = vsel %vm1738_vm15, %v1295_v29, %v1039_v30  ;;  %v1046_v45 = vsel %vm1738_vm15, %v1296_v12, %v1045_v2  ;;  %v1052_v48 = vsel %vm1738_vm15, %v1297_v31, %v1051_v37  ;;  %v971_v3 = vadd.f32 %v967_v50, %v903_v7 }
 0x310   : > { %1041 = vst [vmem:[%s1731_s30 + $0x2] sm:$0x1] %v1040_v43  ;;  %v1043_v46 = vsel %vm1738_vm15, %v1017_v38, %v1042_v27  ;;  %v1049_v47 = vsel %vm1738_vm15, %v1019_v39, %v1048_v10  ;;  %v1055_v49 = vsel %vm1738_vm15, %v1021_v40, %v1054_v41 }
 0x311   : > { %1044 = vst [vmem:[%s1731_s30 + $0x3] sm:$0x1] %v1043_v46 }
 0x312   : > { %1047 = vst [vmem:[%s1731_s30 + $0x4] sm:$0x1] %v1046_v45 }
 0x313   : > { %1050 = vst [vmem:[%s1731_s30 + $0x5] sm:$0x1] %v1049_v47  ;;  %v969_v6 = vpop.f32.mrf.mxu3 }
 0x314   : > { %1053 = vst [vmem:[%s1731_s30 + $0x6] sm:$0x1] %v1052_v48 }
 0x315   : > { %1056 = vst [vmem:[%s1731_s30 + $0x7] sm:$0x1] %v1055_v49  ;;  %v1110_v61 = vld [vmem:[%s1731_s30] sm:$0x1] }
 0x316   : > { %972 = vst.msk [vmem:[#allocation4 + $0x8] sm:$0xff] %vm498_vm7, %v971_v3  ;;  %v1113_v36 = vld [vmem:[%s1731_s30 + $0x1] sm:$0x1] }
 0x317   : > { %v1116_v44 = vld [vmem:[%s1731_s30 + $0x2] sm:$0x1] }
 0x318   : > { %v1119_v28 = vld [vmem:[%s1731_s30 + $0x3] sm:$0x1] }
 0x319   : > { %v1122_v22 = vld [vmem:[%s1731_s30 + $0x4] sm:$0x1] }
 0x31a   : > { %v1125_v50 = vld [vmem:[%s1731_s30 + $0x5] sm:$0x1] }
 0x31b   : > { %v1128_v32 = vld [vmem:[%s1731_s30 + $0x6] sm:$0x1] }
 0x31c   : > { %v1131_v5 = vld [vmem:[%s1731_s30 + $0x7] sm:$0x1] }
 0x31d   : > { %v1058_v63 = vld [vmem:[#allocation4 + $0x8] sm:$0xff] }
 0x37e   : > { %v1065_v4 = vpop.permute.xlu1 %1064 }
 0x37f   : > { %v1067_v9 = vmul.f32 %v1065_v4, %v1058_v63 }
 0x381   : > { %v1068_v51 = vpack.c.bf16 %v1067_v9, %v1067_v9 }
 0x383   : > { %v1070_v11 = vrot.slane %v1068_v51, 3 }
 0x385   : > { %v1073_v53 = vsel %vm989_vm12, %v1068_v51, %v1070_v11  ;;  %v1075_v35 = vsel %vm581_vm0, %v1068_v51, %v1070_v11  ;;  %v1078_v15 = vsel %vm584_vm1, %v1068_v51, %v1070_v11  ;;  %v1081_v60 = vsel %vm587_vm2, %v1068_v51, %v1070_v11 }
 0x386   : > { %v1077_v34 = vrot.slane %v1075_v35, 1  ;;  %v1080_v54 = vrot.slane %v1078_v15, 2  ;;  %v1083_v14 = vrot.slane %v1081_v60, 3  ;;  %v1085_v18 = vunpack.i.h.s16 %v1073_v53 }
 0x387   : > { %v1298_v55 = vpack.i.b16 %v1073_v53, %v1073_v53 }
 0x388   : > { %v1087_v56 = vunpack.i.h.s16 %v1077_v34  ;;  %v1089_v13 = vunpack.i.h.s16 %v1080_v54  ;;  %v1091_v57 = vunpack.i.h.s16 %v1083_v14  ;;  %v1093_v59 = vpack.i.b16 %v1085_v18, %v1085_v18 }
 0x389   : > { %v1299_v23 = vpack.i.b16 %v1077_v34, %v1077_v34  ;;  %v1300_v62 = vpack.i.b16 %v1080_v54, %v1080_v54  ;;  %v1301_v0 = vpack.i.b16 %v1083_v14, %v1083_v14  ;;  %v1111_v1 = vsel %vm1780_vm4, %v1298_v55, %v1110_v61 }
 0x38a   : > { %v1095_v19 = vpack.i.b16 %v1087_v56, %v1087_v56  ;;  %v1097_v20 = vpack.i.b16 %v1089_v13, %v1089_v13  ;;  %v1099_v21 = vpack.i.b16 %v1091_v57, %v1091_v57  ;;  %1112 = vst [vmem:[%s1731_s30] sm:$0x1] %v1111_v1  ;;  %v1114_v42 = vsel %vm1780_vm4, %v1093_v59, %v1113_v36 }
 0x38b   : > { %1115 = vst [vmem:[%s1731_s30 + $0x1] sm:$0x1] %v1114_v42  ;;  %v1117_v26 = vsel %vm1780_vm4, %v1299_v23, %v1116_v44  ;;  %v1123_v58 = vsel %vm1780_vm4, %v1300_v62, %v1122_v22  ;;  %v1129_v33 = vsel %vm1780_vm4, %v1301_v0, %v1128_v32 }
 0x38c   : > { %1118 = vst [vmem:[%s1731_s30 + $0x2] sm:$0x1] %v1117_v26  ;;  %v1120_v30 = vsel %vm1780_vm4, %v1095_v19, %v1119_v28  ;;  %v1126_v2 = vsel %vm1780_vm4, %v1097_v20, %v1125_v50  ;;  %v1132_v24 = vsel %vm1780_vm4, %v1099_v21, %v1131_v5 }
 0x38d   : > { %1121 = vst [vmem:[%s1731_s30 + $0x3] sm:$0x1] %v1120_v30 }
 0x38e   : > { %1124 = vst [vmem:[%s1731_s30 + $0x4] sm:$0x1] %v1123_v58 }
 0x38f   : > { %1127 = vst [vmem:[%s1731_s30 + $0x5] sm:$0x1] %v1126_v2 }
 0x390   : > { %1130 = vst [vmem:[%s1731_s30 + $0x6] sm:$0x1] %v1129_v33 }
 0x391   : > { %1133 = vst [vmem:[%s1731_s30 + $0x7] sm:$0x1] %v1132_v24 }
 0x392 PF: > { %s13_s16 = sadd.s32 1, %s1401_s16   ;;  %s1840_s12 = smov %s1389_s13 }
 0x393   : > { %p10_p10 = scmp.ge.s32.totalorder %s13_s16, 4   ;;  %s1841_s13 = smov %s1465_s21 }
 0x394   : > { %s1842_s14 = smov %s1397_s15  ;;  %s1843_s15 = smov %s1845_s17 }
 0x395   :  { %12 = sbr.rel (!%p10_p10) target bundleno = 3 (0x3), region = 223 }

// kernel: _lambda_.17
= control target key start
LH: loop header
LB: loop body
LE: loop exit
PB: predicated region body
PF: predicated region fallthrough
CT: control target
= control target key end

     0   :  { %s238_s0 = inlined_call_operand.vmem [shape: bf16[16,32], index: 0, kind: input, shape index: {}]   ;;  %s239_s1 = inlined_call_operand.vmem [shape: f32[1,32], index: 1, kind: input, shape index: {}]   ;;  %s240_s2 = inlined_call_operand.vmem [shape: bf16[32,64], index: 2, kind: input, shape index: {}]   ;;  %s241_s3 = inlined_call_operand.hbm [shape: f32[16,64], index: 3, kind: output, shape index: {}]  }
   0x1   :  { %v156_v0 = vld [vmem:[%s238_s0] sm:$0xff]  }
   0x2   :  { %v157_v1 = vunpack.c.l.bf16 %v156_v0 }
   0x3   :  { %8 = vsyncpa [#allocation4], 0  ;;  %vm26_vm0 = vcmask 261120   ;;  %v158_v3 = vunpack.c.h.bf16 %v156_v0  ;;  %v196_v7 = vmov 32.0   ;;  %v154_v17 = vld [vmem:[%s240_s2 + $0x8] sm:$0xff]  ;;  %v153_v18 = vld [vmem:[%s240_s2] sm:$0xff] }
   0x4   :  { %v24_v2 = vmul.f32 %v157_v1, %v157_v1  ;;  %164 = vrcp.f32 %v196_v7  ;;  %110 = vmatpush.bf16.msra.mxu0 %v154_v17  ;;  %v163_v30 = vld [vmem:[%s239_s1] ss:$0 sm:$0xff]  ;;  %vm74_vm5 = vcmask 257024   ;;  %vm118_vm9 = vcmask 523264   ;;  %s197_s1 = smov [#allocation3]   ;;  %s127_s21 = sshll.u32 %s241_s3, 4  ;;  %s128_s21 = int_to_ptr.hbm [resolvable:$true] %s127_s21 }
   0x5   :  { %v25_v5 = vmul.f32 %v158_v3, %v158_v3  ;;  %s125_s2 = sshll.u32 %s197_s1, 4  ;;  %s198_s22 = smov 128   ;;  %s126_s2 = int_to_ptr.vmem [resolvable:$true] %s125_s2 }
   0x6   :  { %v27_v4 = vsel %vm26_vm0, %v24_v2, 0.0  ;;  %s199_s23 = smov 8  }
   0x7   :  { %28 = vadd.xlane.f32.xlu0 %v27_v4  ;;  %v30_v6 = vsel %vm26_vm0, %v25_v5, 0.0 }
   0x8   :  { %111 = vmatpush.bf16.msra.mxu0 %v153_v18 }
   0xa   :  { %v165_v8 = vpop.eup %164 }
   0xb   :  { %v34_v9 = vmul.f32 32.0, %v165_v8  ;;  %vm38_vm1 = vweird.f32 %v165_v8 }
   0xd   :  { %v35_v10 = vsub.f32 1.0, %v34_v9 }
   0xf   :  { %31 = vadd.xlane.f32.xlu0 %v30_v6  ;;  %v36_v11 = vmul.f32 %v165_v8, %v35_v10 }
  0x11   :  { %v37_v12 = vadd.f32 %v165_v8, %v36_v11 }
  0x13   :  { %v39_v13 = vsel %vm38_vm1, %v165_v8, %v37_v12 }
  0x7a   :  { %v29_v14 = vpop.xlane.xlu0 %28 }
  0x7b   :  { %v40_v15 = vmul.f32 %v39_v13, %v29_v14 }
  0x7d   :  { %v42_v16 = vadd.f32 1e-05, %v40_v15 }
  0x7f   :  { %166 = vrsqrt.f32 %v42_v16  ;;  %vm50_vm3 = vweird.f32 %v42_v16 }
  0x82   :  { %v32_v19 = vpop.xlane.xlu0 %31 }
  0x83   :  { %v41_v20 = vmul.f32 %v39_v13, %v32_v19 }
  0x85   :  { %v167_v21 = vpop.eup %166  ;;  %v43_v22 = vadd.f32 1e-05, %v41_v20 }
  0x86   :  { %v45_v23 = vmul.f32 %v167_v21, %v42_v16  ;;  %vm51_vm2 = vweird.f32 %v167_v21 }
  0x87   :  { %168 = vrsqrt.f32 %v43_v22  ;;  %vm52_vm4 = vmor %vm50_vm3, %vm51_vm2  ;;  %vm60_vm7 = vweird.f32 %v43_v22 }
  0x88   :  { %v46_v24 = vmul.f32 %v167_v21, %v45_v23 }
  0x8a   :  { %v47_v25 = vmul.f32 0.5, %v46_v24 }
  0x8c   :  { %v48_v26 = vsub.f32 1.5, %v47_v25 }
  0x8d   :  { %v169_v27 = vpop.eup %168 }
  0x8e   :  { %v49_v28 = vmul.f32 %v167_v21, %v48_v26  ;;  %v55_v29 = vmul.f32 %v169_v27, %v43_v22  ;;  %vm61_vm6 = vweird.f32 %v169_v27 }
  0x8f   :  { %vm62_vm8 = vmor %vm60_vm7, %vm61_vm6 }
  0x90   :  { %v53_v31 = vsel %vm52_vm4, %v167_v21, %v49_v28  ;;  %v56_v32 = vmul.f32 %v169_v27, %v55_v29 }
  0x91   :  { %v64_v33 = vmul.f32 %v157_v1, %v53_v31 }
  0x92   :  { %v57_v34 = vmul.f32 0.5, %v56_v32 }
  0x93   :  { %v70_v35 = vmul.f32 %v163_v30, %v64_v33 }
  0x94   :  { %v58_v36 = vsub.f32 1.5, %v57_v34 }
  0x95   :  { %v72_v37 = vpack.c.bf16 %v70_v35, %v70_v35 }
  0x96   :  { %v59_v38 = vmul.f32 %v169_v27, %v58_v36 }
  0x97   :  { %75 = vst.msk [vmem:[#allocation2] sm:$0xf] %vm74_vm5, %v72_v37 }
  0x98   :  { %v63_v39 = vsel %vm62_vm8, %v169_v27, %v59_v38 }
  0x99   :  { %v65_v40 = vmul.f32 %v158_v3, %v63_v39 }
  0x9b   :  { %v71_v41 = vmul.f32 %v163_v30, %v65_v40 }
  0x9d   :  { %v73_v42 = vpack.c.bf16 %v71_v41, %v71_v41 }
  0x9f   :  { %76 = vst.msk [vmem:[#allocation2 + $0x4] sm:$0xf] %vm74_vm5, %v73_v42 }
  0xa6   :  { %v152_v43 = vld [vmem:[#allocation2] sm:$0xff] }
  0xa7   :  { %151 = vmatmul.msk.bf16.vlgmr.msra.gmra.mxu0 %vm26_vm0, %v152_v43 }
 0x124   :  { %v113_v44 = vpop.f32.mrf.mxu0 }
 0x125   :  { %119 = vst.msk [vmem:[#allocation3] sm:$0xff] %vm118_vm9, %v113_v44 }
 0x12c   :  { %v115_v45 = vpop.f32.mrf.mxu0 }
 0x12d   :  { %120 = vst.msk [vmem:[#allocation3 + $0x8] sm:$0xff] %vm118_vm9, %v115_v45 }
 0x12e   :  { %133 = dma.vmem_to_hbm [thread:$0]  %s126_s2, 256, %s128_s21, [#allocation4], %s198_s22, %s198_s22, %s199_s23  }
 0x12f   :  { %194 = dma.done.wait [#allocation4], 256  }
 0x130   :  { %195 = vsyncadd [#allocation4], 4294967040 }
 0x131   :  { %138 = vsyncpa [#allocation4], 1 }

</bundles_post_ra>
